<compile_context>
chip_gen: v7x
topology: tpu7x:2x2x1
jax: 0.10.0
libtpu: 0.0.40
codegen_flags: <defaults>
</compile_context>

<pallas_src>
import functools

import jax
import jax.numpy as jnp
from jax.experimental import pallas as pl
from jax.experimental.pallas import tpu as pltpu


# ----------------------------------------------------------------------------- kernel

def _three_unit_kernel(x_ref, m1_ref, m2_ref, b1_ref, b2_ref, out_ref, *, H, W, Nb):
    """Fused threeUnit forward for a block of Nb batch elements.

    x_ref   : (Nb, C*D, H*W) VMEM   channel-stacked activations (lane axis = flat H*W)
    m1_ref  : (9, C*D, C*D)  VMEM   stage-1 per-tap channel-mix matrices
                                    (tap kh*3+kw; centre tap also holds the full
                                     3x1x1 spectral conv folded in)
    m2_ref  : (9, C*D, C*D)  VMEM   stage-2 (spatial_one) per-tap matrices
    b1_ref  : (C*D, 1)       VMEM   b_spatial + b_spectral, expanded over D
    b2_ref  : (C*D, 1)       VMEM   b_spatial_one, expanded over D
    out_ref : (Nb, C*D, H*W) VMEM
    """
    HW = H * W
    f32 = jnp.float32

    # ---- hoisted once per grid step (shared by both conv stages and all Nb images) ----
    # Boundary predicates on the flattened H*W lane axis: they zero the lanes a roll
    # wraps across an image edge, implementing the conv's zero padding.
    lane = jax.lax.broadcasted_iota(jnp.int32, (1, HW), 1)
    w_col = (lane & (W - 1)) if (W & (W - 1)) == 0 else lane % W
    w_lo, w_hi = w_col > 0, w_col < (W - 1)
    h_lo, h_hi = lane >= W, lane < (H - 1) * W

    taps = []  # (tap index kh*3+kw, lane offset, float {0,1} edge mask) for off-centre taps
    for kh in range(3):
        for kw in range(3):
            dh, dw = kh - 1, kw - 1
            if dh == 0 and dw == 0:
                continue
            mask = None
            for cond, need in ((w_lo, dw == -1), (w_hi, dw == 1),
                               (h_lo, dh == -1), (h_hi, dh == 1)):
                if need:
                    mask = cond if mask is None else jnp.logical_and(mask, cond)
            taps.append((kh * 3 + kw, dh * W + dw, mask.astype(f32)))

    b1 = b1_ref[...]                     # (C*D, 1), broadcast-added along lanes
    b2 = b2_ref[...]

    def conv_1x3x3(src, m_ref):
        """out = sum_tap M[tap] @ (shifted+masked src).  src: (C*D, H*W).
        Shifts are lane rolls on the flat H*W axis; the 4x4 channel mix (and, for
        stage 1, the whole 3x1x1 spectral conv) rides the MXU."""
        acc = jnp.dot(m_ref[4], src, preferred_element_type=f32)       # centre: no roll/mask
        for t, off, maskf in taps:
            tap = pltpu.roll(src, shift=(-off) % HW, axis=1)           # out[p] = src[p+off]
            tap = tap * maskf                                          # zero padding at edges
            acc = acc + jnp.dot(m_ref[t], tap, preferred_element_type=f32)
        return acc

    # ---- per image: intermediate activation never leaves vregs/VMEM -------------------
    # Nb is small and static -> full unroll keeps the LLO scheduler's view simple.
    for n in range(Nb):
        slab = x_ref[n]                                                # (C*D, H*W)
        o1 = jnp.maximum(conv_1x3x3(slab, m1_ref) + b1, 0.0)           # spatial+spectral+bias
        out_ref[n] = conv_1x3x3(o1, m2_ref) + b2 + x_ref[n]            # spatial_one+bias+resid


# ----------------------------------------------------------------------------- glue

def weight_norm(v, g):
    """nn.utils.weight_norm with dim=0: w = g * v / ||v||, norm over (cin, kd, kh, kw)."""
    norm = jnp.sqrt(jnp.sum(v * v, axis=(1, 2, 3, 4), keepdims=True))
    return v * (g.reshape(-1, 1, 1, 1, 1) / norm)


def _tap_matrices(w_spatial, D, w_spectral=None):
    """Per-tap (C*D, C*D) channel-mix matrices for a (1,3,3) conv on the channel-stacked
    slab: M[kh*3+kw] = W[:, :, 0, kh, kw] (x) I_D.  If w_spectral is given, the whole
    (3,1,1) spectral conv  sum_kd W_sc[:, :, kd] (x) Shift(kd-1)  is folded into the
    centre tap so it costs zero extra matmuls in the kernel."""
    eye = jnp.eye(D, dtype=jnp.float32)
    mats = jnp.stack([jnp.kron(w_spatial[:, :, 0, kh, kw].astype(jnp.float32), eye)
                      for kh in range(3) for kw in range(3)])          # (9, C*D, C*D)
    if w_spectral is not None:
        spec = sum(jnp.kron(w_spectral[:, :, kd, 0, 0].astype(jnp.float32),
                            jnp.eye(D, k=kd - 1, dtype=jnp.float32))   # Shift[d,d'] = [d'==d+kd-1]
                   for kd in range(3))
        mats = mats.at[4].add(spec)
    return mats


def _pick_batch_block(n_batch):
    """Images per grid step: amortize the ~0.35 us per-step overhead (bigger DMAs) while
    keeping >= 2 grid steps when N >= 2 so both v7x TensorCores get work, and nb | N."""
    nb = min(8, n_batch)
    if n_batch >= 2:
        nb = min(nb, n_batch // 2)
    nb = max(nb, 1)
    while n_batch % nb:
        nb -= 1
    return nb


def three_unit_forward(x_ncdhw, params):
    """Pallas implementation of threeUnit.forward. Input/output are NCDHW like PyTorch."""
    w_sp = weight_norm(params["v_spatial"], params["g_spatial"])
    w_sc = weight_norm(params["v_spectral"], params["g_spectral"])
    w_s1 = weight_norm(params["v_spatial_one"], params["g_spatial_one"])

    N, C, D, H, W = x_ncdhw.shape
    HW, CD = H * W, C * D
    assert HW % 128 == 0, "flattened H*W must be a multiple of 128 (lane axis)"
    assert CD % 8 == 0, "C*D must be a multiple of 8 (sublane axis)"

    x = x_ncdhw.reshape(N, CD, HW).astype(jnp.float32)        # free reshape, lane dense

    m1 = _tap_matrices(w_sp, D, w_spectral=w_sc)              # (9, CD, CD)
    m2 = _tap_matrices(w_s1, D)                               # (9, CD, CD)
    b1 = jnp.repeat((params["b_spatial"] + params["b_spectral"]).astype(jnp.float32),
                    D).reshape(CD, 1)
    b2 = jnp.repeat(params["b_spatial_one"].astype(jnp.float32), D).reshape(CD, 1)

    nb = _pick_batch_block(N)
    grid = (N // nb,)
    # VMEM per step: (in + out) * double-buffer = 4 * nb * CD * HW * 4B  (<= ~1 MiB here),
    # plus ~80 KiB of weights -> far below the 32 MiB scoped default on all generations.

    out = pl.pallas_call(
        functools.partial(_three_unit_kernel, H=H, W=W, Nb=nb),
        out_shape=jax.ShapeDtypeStruct((N, CD, HW), jnp.float32),
        grid=grid,
        in_specs=[
            pl.BlockSpec((nb, CD, HW), lambda g: (g, 0, 0)),          # activations
            pl.BlockSpec((9, CD, CD), lambda g: (0, 0, 0)),           # stage-1 tap matrices
            pl.BlockSpec((9, CD, CD), lambda g: (0, 0, 0)),           # stage-2 tap matrices
            pl.BlockSpec((CD, 1), lambda g: (0, 0)),                  # bias 1
            pl.BlockSpec((CD, 1), lambda g: (0, 0)),                  # bias 2
        ],
        out_specs=pl.BlockSpec((nb, CD, HW), lambda g: (g, 0, 0)),
        compiler_params=pltpu.CompilerParams(dimension_semantics=("parallel",)),
    )(x, m1, m2, b1, b2)
    # TODO(synk): for N == 1 on v7x, split the flat H*W axis in halves (one-row halo for
    # the dh=+-1 taps) so both TensorCores get work.
    return out.reshape(N, C, D, H, W)


def init_params(key, n_feats):
    ks = jax.random.split(key, 9)
    C = n_feats
    scale = 0.1
    return {
        "v_spatial": scale * jax.random.normal(ks[0], (C, C, 1, 3, 3), jnp.float32),
        "g_spatial": 1.0 + 0.1 * jax.random.normal(ks[1], (C,), jnp.float32),
        "b_spatial": 0.1 * jax.random.normal(ks[2], (C,), jnp.float32),
        "v_spectral": scale * jax.random.normal(ks[3], (C, C, 3, 1, 1), jnp.float32),
        "g_spectral": 1.0 + 0.1 * jax.random.normal(ks[4], (C,), jnp.float32),
        "b_spectral": 0.1 * jax.random.normal(ks[5], (C,), jnp.float32),
        "v_spatial_one": scale * jax.random.normal(ks[6], (C, C, 1, 3, 3), jnp.float32),
        "g_spatial_one": 1.0 + 0.1 * jax.random.normal(ks[7], (C,), jnp.float32),
        "b_spatial_one": 0.1 * jax.random.normal(ks[8], (C,), jnp.float32),
    }


# ----------------------------------------------------------------------------- pure-JAX reference

def _conv3d_ref(x, w, b, padding):
    out = jax.lax.conv_general_dilated(
        x, w, window_strides=(1, 1, 1), padding=padding,
        dimension_numbers=("NCDHW", "OIDHW", "NCDHW"))
    return out + b.reshape(1, -1, 1, 1, 1)


def three_unit_ref(x, params):
    w_sp = weight_norm(params["v_spatial"], params["g_spatial"])
    w_sc = weight_norm(params["v_spectral"], params["g_spectral"])
    w_s1 = weight_norm(params["v_spatial_one"], params["g_spatial_one"])
    out = (_conv3d_ref(x, w_sp, params["b_spatial"], [(0, 0), (1, 1), (1, 1)]) +
           _conv3d_ref(x, w_sc, params["b_spectral"], [(1, 1), (0, 0), (0, 0)]))
    out = jnp.maximum(out, 0.0)
    out = _conv3d_ref(out, w_s1, params["b_spatial_one"], [(0, 0), (1, 1), (1, 1)]) + x
    return out


# ----------------------------------------------------------------------------- main

if __name__ == "__main__":
    key = jax.random.PRNGKey(0)
    k_x, k_p = jax.random.split(key)

    N, C, D, H, W = 2, 4, 8, 16, 16          # n_feats = 4, spectral depth = 8
    x = jax.random.normal(k_x, (N, C, D, H, W), jnp.float32)
    params = init_params(k_p, C)

    out = jax.block_until_ready(three_unit_forward(x, params))
    ref = jax.block_until_ready(three_unit_ref(x, params))

    assert out.shape == x.shape, (out.shape, x.shape)
    assert jnp.allclose(out, ref, rtol=1e-4, atol=2e-4), float(jnp.max(jnp.abs(out - ref)))

    print("KERNEL_OK")
</pallas_src>

<mosaic_0001>
module attributes {stable_mosaic.version = 11 : i64} {
  func.func @_three_unit_kernel(%arg0: i32, %arg1: memref<1x32x256xf32, #tpu.memory_space<vmem>>, %arg2: memref<9x32x32xf32, #tpu.memory_space<vmem>>, %arg3: memref<9x32x32xf32, #tpu.memory_space<vmem>>, %arg4: memref<32x1xf32, #tpu.memory_space<vmem>>, %arg5: memref<32x1xf32, #tpu.memory_space<vmem>>, %arg6: memref<1x32x256xf32, #tpu.memory_space<vmem>>) attributes {dimension_semantics = [#tpu.dimension_semantics<parallel>], iteration_bounds = array<i64: 2>, scalar_prefetch = 0 : i64, scratch_operands = 0 : i64, tpu.core_type = #tpu.core_type<tc>, window_params = [{transform_indices = @transform_0, window_bounds = array<i64: 1, 32, 256>}, {pipeline_mode = #tpu.pipeline_mode<synchronous>, transform_indices = @transform_1, window_bounds = array<i64: 9, 32, 32>}, {pipeline_mode = #tpu.pipeline_mode<synchronous>, transform_indices = @transform_2, window_bounds = array<i64: 9, 32, 32>}, {pipeline_mode = #tpu.pipeline_mode<synchronous>, transform_indices = @transform_3, window_bounds = array<i64: 32, 1>}, {pipeline_mode = #tpu.pipeline_mode<synchronous>, transform_indices = @transform_4, window_bounds = array<i64: 32, 1>}, {transform_indices = @transform_5, window_bounds = array<i64: 1, 32, 256>}]} {
    %0 = tpu.iota {dimensions = array<i32: 1>} : vector<1x256xi32>
    %c15_i32 = arith.constant 15 : i32
    %1 = vector.broadcast %c15_i32 : i32 to vector<1x256xi32>
    %2 = arith.andi %0, %1 : vector<1x256xi32>
    %c0_i32 = arith.constant 0 : i32
    %3 = vector.broadcast %c0_i32 : i32 to vector<1x256xi32>
    %4 = arith.cmpi sgt, %2, %3 : vector<1x256xi32>
    %c15_i32_0 = arith.constant 15 : i32
    %5 = vector.broadcast %c15_i32_0 : i32 to vector<1x256xi32>
    %6 = arith.cmpi slt, %2, %5 : vector<1x256xi32>
    %c16_i32 = arith.constant 16 : i32
    %7 = vector.broadcast %c16_i32 : i32 to vector<1x256xi32>
    %8 = arith.cmpi sge, %0, %7 : vector<1x256xi32>
    %c240_i32 = arith.constant 240 : i32
    %9 = vector.broadcast %c240_i32 : i32 to vector<1x256xi32>
    %10 = arith.cmpi slt, %0, %9 : vector<1x256xi32>
    %11 = arith.andi %4, %8 : vector<1x256xi1>
    %12 = arith.extui %11 : vector<1x256xi1> to vector<1x256xi32>
    %13 = arith.sitofp %12 : vector<1x256xi32> to vector<1x256xf32>
    %14 = arith.extui %8 : vector<1x256xi1> to vector<1x256xi32>
    %15 = arith.sitofp %14 : vector<1x256xi32> to vector<1x256xf32>
    %16 = arith.andi %6, %8 : vector<1x256xi1>
    %17 = arith.extui %16 : vector<1x256xi1> to vector<1x256xi32>
    %18 = arith.sitofp %17 : vector<1x256xi32> to vector<1x256xf32>
    %19 = arith.extui %4 : vector<1x256xi1> to vector<1x256xi32>
    %20 = arith.sitofp %19 : vector<1x256xi32> to vector<1x256xf32>
    %21 = arith.extui %6 : vector<1x256xi1> to vector<1x256xi32>
    %22 = arith.sitofp %21 : vector<1x256xi32> to vector<1x256xf32>
    %23 = arith.andi %4, %10 : vector<1x256xi1>
    %24 = arith.extui %23 : vector<1x256xi1> to vector<1x256xi32>
    %25 = arith.sitofp %24 : vector<1x256xi32> to vector<1x256xf32>
    %26 = arith.extui %10 : vector<1x256xi1> to vector<1x256xi32>
    %27 = arith.sitofp %26 : vector<1x256xi32> to vector<1x256xf32>
    %28 = arith.andi %6, %10 : vector<1x256xi1>
    %29 = arith.extui %28 : vector<1x256xi1> to vector<1x256xi32>
    %30 = arith.sitofp %29 : vector<1x256xi32> to vector<1x256xf32>
    %c0 = arith.constant 0 : index
    %c0_1 = arith.constant 0 : index
    %31 = vector.load %arg4[%c0, %c0_1] : memref<32x1xf32, #tpu.memory_space<vmem>>, vector<32x1xf32>
    %c0_2 = arith.constant 0 : index
    %c0_3 = arith.constant 0 : index
    %32 = vector.load %arg5[%c0_2, %c0_3] : memref<32x1xf32, #tpu.memory_space<vmem>>, vector<32x1xf32>
    %c0_4 = arith.constant 0 : index
    %c0_5 = arith.constant 0 : index
    %c0_6 = arith.constant 0 : index
    %33 = vector.load %arg1[%c0_4, %c0_5, %c0_6] : memref<1x32x256xf32, #tpu.memory_space<vmem>>, vector<1x32x256xf32>
    %34 = vector.shape_cast %33 : vector<1x32x256xf32> to vector<32x256xf32>
    %c4 = arith.constant 4 : index
    %c0_7 = arith.constant 0 : index
    %c0_8 = arith.constant 0 : index
    %35 = vector.load %arg2[%c4, %c0_7, %c0_8] : memref<9x32x32xf32, #tpu.memory_space<vmem>>, vector<1x32x32xf32>
    %36 = vector.shape_cast %35 : vector<1x32x32xf32> to vector<32x32xf32>
    %cst = arith.constant dense<0.000000e+00> : vector<32x256xf32>
    %37 = tpu.matmul %36, %34, %cst {dimension_numbers = #tpu.dot_dimension_numbers<[1], [0], [0], [1], [0, 0, 1, 1], [], []>} : vector<32x32xf32>, vector<32x256xf32>, vector<32x256xf32> -> vector<32x256xf32>
    %c17_i32 = arith.constant 17 : i32
    %38 = tpu.dynamic_rotate %34 by %c17_i32 dim 1 : vector<32x256xf32>, i32 -> vector<32x256xf32>
    %39 = vector.broadcast %13 : vector<1x256xf32> to vector<32x256xf32>
    %40 = arith.mulf %38, %39 : vector<32x256xf32>
    %c0_9 = arith.constant 0 : index
    %c0_10 = arith.constant 0 : index
    %c0_11 = arith.constant 0 : index
    %41 = vector.load %arg2[%c0_9, %c0_10, %c0_11] : memref<9x32x32xf32, #tpu.memory_space<vmem>>, vector<1x32x32xf32>
    %42 = vector.shape_cast %41 : vector<1x32x32xf32> to vector<32x32xf32>
    %cst_12 = arith.constant dense<0.000000e+00> : vector<32x256xf32>
    %43 = tpu.matmul %42, %40, %cst_12 {dimension_numbers = #tpu.dot_dimension_numbers<[1], [0], [0], [1], [0, 0, 1, 1], [], []>} : vector<32x32xf32>, vector<32x256xf32>, vector<32x256xf32> -> vector<32x256xf32>
    %44 = arith.addf %37, %43 : vector<32x256xf32>
    %c16_i32_13 = arith.constant 16 : i32
    %45 = tpu.dynamic_rotate %34 by %c16_i32_13 dim 1 : vector<32x256xf32>, i32 -> vector<32x256xf32>
    %46 = vector.broadcast %15 : vector<1x256xf32> to vector<32x256xf32>
    %47 = arith.mulf %45, %46 : vector<32x256xf32>
    %c1 = arith.constant 1 : index
    %c0_14 = arith.constant 0 : index
    %c0_15 = arith.constant 0 : index
    %48 = vector.load %arg2[%c1, %c0_14, %c0_15] : memref<9x32x32xf32, #tpu.memory_space<vmem>>, vector<1x32x32xf32>
    %49 = vector.shape_cast %48 : vector<1x32x32xf32> to vector<32x32xf32>
    %cst_16 = arith.constant dense<0.000000e+00> : vector<32x256xf32>
    %50 = tpu.matmul %49, %47, %cst_16 {dimension_numbers = #tpu.dot_dimension_numbers<[1], [0], [0], [1], [0, 0, 1, 1], [], []>} : vector<32x32xf32>, vector<32x256xf32>, vector<32x256xf32> -> vector<32x256xf32>
    %51 = arith.addf %44, %50 : vector<32x256xf32>
    %c15_i32_17 = arith.constant 15 : i32
    %52 = tpu.dynamic_rotate %34 by %c15_i32_17 dim 1 : vector<32x256xf32>, i32 -> vector<32x256xf32>
    %53 = vector.broadcast %18 : vector<1x256xf32> to vector<32x256xf32>
    %54 = arith.mulf %52, %53 : vector<32x256xf32>
    %c2 = arith.constant 2 : index
    %c0_18 = arith.constant 0 : index
    %c0_19 = arith.constant 0 : index
    %55 = vector.load %arg2[%c2, %c0_18, %c0_19] : memref<9x32x32xf32, #tpu.memory_space<vmem>>, vector<1x32x32xf32>
    %56 = vector.shape_cast %55 : vector<1x32x32xf32> to vector<32x32xf32>
    %cst_20 = arith.constant dense<0.000000e+00> : vector<32x256xf32>
    %57 = tpu.matmul %56, %54, %cst_20 {dimension_numbers = #tpu.dot_dimension_numbers<[1], [0], [0], [1], [0, 0, 1, 1], [], []>} : vector<32x32xf32>, vector<32x256xf32>, vector<32x256xf32> -> vector<32x256xf32>
    %58 = arith.addf %51, %57 : vector<32x256xf32>
    %c1_i32 = arith.constant 1 : i32
    %59 = tpu.dynamic_rotate %34 by %c1_i32 dim 1 : vector<32x256xf32>, i32 -> vector<32x256xf32>
    %60 = vector.broadcast %20 : vector<1x256xf32> to vector<32x256xf32>
    %61 = arith.mulf %59, %60 : vector<32x256xf32>
    %c3 = arith.constant 3 : index
    %c0_21 = arith.constant 0 : index
    %c0_22 = arith.constant 0 : index
    %62 = vector.load %arg2[%c3, %c0_21, %c0_22] : memref<9x32x32xf32, #tpu.memory_space<vmem>>, vector<1x32x32xf32>
    %63 = vector.shape_cast %62 : vector<1x32x32xf32> to vector<32x32xf32>
    %cst_23 = arith.constant dense<0.000000e+00> : vector<32x256xf32>
    %64 = tpu.matmul %63, %61, %cst_23 {dimension_numbers = #tpu.dot_dimension_numbers<[1], [0], [0], [1], [0, 0, 1, 1], [], []>} : vector<32x32xf32>, vector<32x256xf32>, vector<32x256xf32> -> vector<32x256xf32>
    %65 = arith.addf %58, %64 : vector<32x256xf32>
    %c255_i32 = arith.constant 255 : i32
    %66 = tpu.dynamic_rotate %34 by %c255_i32 dim 1 : vector<32x256xf32>, i32 -> vector<32x256xf32>
    %67 = vector.broadcast %22 : vector<1x256xf32> to vector<32x256xf32>
    %68 = arith.mulf %66, %67 : vector<32x256xf32>
    %c5 = arith.constant 5 : index
    %c0_24 = arith.constant 0 : index
    %c0_25 = arith.constant 0 : index
    %69 = vector.load %arg2[%c5, %c0_24, %c0_25] : memref<9x32x32xf32, #tpu.memory_space<vmem>>, vector<1x32x32xf32>
    %70 = vector.shape_cast %69 : vector<1x32x32xf32> to vector<32x32xf32>
    %cst_26 = arith.constant dense<0.000000e+00> : vector<32x256xf32>
    %71 = tpu.matmul %70, %68, %cst_26 {dimension_numbers = #tpu.dot_dimension_numbers<[1], [0], [0], [1], [0, 0, 1, 1], [], []>} : vector<32x32xf32>, vector<32x256xf32>, vector<32x256xf32> -> vector<32x256xf32>
    %72 = arith.addf %65, %71 : vector<32x256xf32>
    %c241_i32 = arith.constant 241 : i32
    %73 = tpu.dynamic_rotate %34 by %c241_i32 dim 1 : vector<32x256xf32>, i32 -> vector<32x256xf32>
    %74 = vector.broadcast %25 : vector<1x256xf32> to vector<32x256xf32>
    %75 = arith.mulf %73, %74 : vector<32x256xf32>
    %c6 = arith.constant 6 : index
    %c0_27 = arith.constant 0 : index
    %c0_28 = arith.constant 0 : index
    %76 = vector.load %arg2[%c6, %c0_27, %c0_28] : memref<9x32x32xf32, #tpu.memory_space<vmem>>, vector<1x32x32xf32>
    %77 = vector.shape_cast %76 : vector<1x32x32xf32> to vector<32x32xf32>
    %cst_29 = arith.constant dense<0.000000e+00> : vector<32x256xf32>
    %78 = tpu.matmul %77, %75, %cst_29 {dimension_numbers = #tpu.dot_dimension_numbers<[1], [0], [0], [1], [0, 0, 1, 1], [], []>} : vector<32x32xf32>, vector<32x256xf32>, vector<32x256xf32> -> vector<32x256xf32>
    %79 = arith.addf %72, %78 : vector<32x256xf32>
    %c240_i32_30 = arith.constant 240 : i32
    %80 = tpu.dynamic_rotate %34 by %c240_i32_30 dim 1 : vector<32x256xf32>, i32 -> vector<32x256xf32>
    %81 = vector.broadcast %27 : vector<1x256xf32> to vector<32x256xf32>
    %82 = arith.mulf %80, %81 : vector<32x256xf32>
    %c7 = arith.constant 7 : index
    %c0_31 = arith.constant 0 : index
    %c0_32 = arith.constant 0 : index
    %83 = vector.load %arg2[%c7, %c0_31, %c0_32] : memref<9x32x32xf32, #tpu.memory_space<vmem>>, vector<1x32x32xf32>
    %84 = vector.shape_cast %83 : vector<1x32x32xf32> to vector<32x32xf32>
    %cst_33 = arith.constant dense<0.000000e+00> : vector<32x256xf32>
    %85 = tpu.matmul %84, %82, %cst_33 {dimension_numbers = #tpu.dot_dimension_numbers<[1], [0], [0], [1], [0, 0, 1, 1], [], []>} : vector<32x32xf32>, vector<32x256xf32>, vector<32x256xf32> -> vector<32x256xf32>
    %86 = arith.addf %79, %85 : vector<32x256xf32>
    %c239_i32 = arith.constant 239 : i32
    %87 = tpu.dynamic_rotate %34 by %c239_i32 dim 1 : vector<32x256xf32>, i32 -> vector<32x256xf32>
    %88 = vector.broadcast %30 : vector<1x256xf32> to vector<32x256xf32>
    %89 = arith.mulf %87, %88 : vector<32x256xf32>
    %c8 = arith.constant 8 : index
    %c0_34 = arith.constant 0 : index
    %c0_35 = arith.constant 0 : index
    %90 = vector.load %arg2[%c8, %c0_34, %c0_35] : memref<9x32x32xf32, #tpu.memory_space<vmem>>, vector<1x32x32xf32>
    %91 = vector.shape_cast %90 : vector<1x32x32xf32> to vector<32x32xf32>
    %cst_36 = arith.constant dense<0.000000e+00> : vector<32x256xf32>
    %92 = tpu.matmul %91, %89, %cst_36 {dimension_numbers = #tpu.dot_dimension_numbers<[1], [0], [0], [1], [0, 0, 1, 1], [], []>} : vector<32x32xf32>, vector<32x256xf32>, vector<32x256xf32> -> vector<32x256xf32>
    %93 = arith.addf %86, %92 : vector<32x256xf32>
    %94 = vector.broadcast %31 : vector<32x1xf32> to vector<32x256xf32>
    %95 = arith.addf %93, %94 : vector<32x256xf32>
    %cst_37 = arith.constant 0.000000e+00 : f32
    %96 = vector.broadcast %cst_37 : f32 to vector<32x256xf32>
    %97 = arith.maximumf %95, %96 : vector<32x256xf32>
    %c4_38 = arith.constant 4 : index
    %c0_39 = arith.constant 0 : index
    %c0_40 = arith.constant 0 : index
    %98 = vector.load %arg3[%c4_38, %c0_39, %c0_40] : memref<9x32x32xf32, #tpu.memory_space<vmem>>, vector<1x32x32xf32>
    %99 = vector.shape_cast %98 : vector<1x32x32xf32> to vector<32x32xf32>
    %cst_41 = arith.constant dense<0.000000e+00> : vector<32x256xf32>
    %100 = tpu.matmul %99, %97, %cst_41 {dimension_numbers = #tpu.dot_dimension_numbers<[1], [0], [0], [1], [0, 0, 1, 1], [], []>} : vector<32x32xf32>, vector<32x256xf32>, vector<32x256xf32> -> vector<32x256xf32>
    %c17_i32_42 = arith.constant 17 : i32
    %101 = tpu.dynamic_rotate %97 by %c17_i32_42 dim 1 : vector<32x256xf32>, i32 -> vector<32x256xf32>
    %102 = vector.broadcast %13 : vector<1x256xf32> to vector<32x256xf32>
    %103 = arith.mulf %101, %102 : vector<32x256xf32>
    %c0_43 = arith.constant 0 : index
    %c0_44 = arith.constant 0 : index
    %c0_45 = arith.constant 0 : index
    %104 = vector.load %arg3[%c0_43, %c0_44, %c0_45] : memref<9x32x32xf32, #tpu.memory_space<vmem>>, vector<1x32x32xf32>
    %105 = vector.shape_cast %104 : vector<1x32x32xf32> to vector<32x32xf32>
    %cst_46 = arith.constant dense<0.000000e+00> : vector<32x256xf32>
    %106 = tpu.matmul %105, %103, %cst_46 {dimension_numbers = #tpu.dot_dimension_numbers<[1], [0], [0], [1], [0, 0, 1, 1], [], []>} : vector<32x32xf32>, vector<32x256xf32>, vector<32x256xf32> -> vector<32x256xf32>
    %107 = arith.addf %100, %106 : vector<32x256xf32>
    %c16_i32_47 = arith.constant 16 : i32
    %108 = tpu.dynamic_rotate %97 by %c16_i32_47 dim 1 : vector<32x256xf32>, i32 -> vector<32x256xf32>
    %109 = vector.broadcast %15 : vector<1x256xf32> to vector<32x256xf32>
    %110 = arith.mulf %108, %109 : vector<32x256xf32>
    %c1_48 = arith.constant 1 : index
    %c0_49 = arith.constant 0 : index
    %c0_50 = arith.constant 0 : index
    %111 = vector.load %arg3[%c1_48, %c0_49, %c0_50] : memref<9x32x32xf32, #tpu.memory_space<vmem>>, vector<1x32x32xf32>
    %112 = vector.shape_cast %111 : vector<1x32x32xf32> to vector<32x32xf32>
    %cst_51 = arith.constant dense<0.000000e+00> : vector<32x256xf32>
    %113 = tpu.matmul %112, %110, %cst_51 {dimension_numbers = #tpu.dot_dimension_numbers<[1], [0], [0], [1], [0, 0, 1, 1], [], []>} : vector<32x32xf32>, vector<32x256xf32>, vector<32x256xf32> -> vector<32x256xf32>
    %114 = arith.addf %107, %113 : vector<32x256xf32>
    %c15_i32_52 = arith.constant 15 : i32
    %115 = tpu.dynamic_rotate %97 by %c15_i32_52 dim 1 : vector<32x256xf32>, i32 -> vector<32x256xf32>
    %116 = vector.broadcast %18 : vector<1x256xf32> to vector<32x256xf32>
    %117 = arith.mulf %115, %116 : vector<32x256xf32>
    %c2_53 = arith.constant 2 : index
    %c0_54 = arith.constant 0 : index
    %c0_55 = arith.constant 0 : index
    %118 = vector.load %arg3[%c2_53, %c0_54, %c0_55] : memref<9x32x32xf32, #tpu.memory_space<vmem>>, vector<1x32x32xf32>
    %119 = vector.shape_cast %118 : vector<1x32x32xf32> to vector<32x32xf32>
    %cst_56 = arith.constant dense<0.000000e+00> : vector<32x256xf32>
    %120 = tpu.matmul %119, %117, %cst_56 {dimension_numbers = #tpu.dot_dimension_numbers<[1], [0], [0], [1], [0, 0, 1, 1], [], []>} : vector<32x32xf32>, vector<32x256xf32>, vector<32x256xf32> -> vector<32x256xf32>
    %121 = arith.addf %114, %120 : vector<32x256xf32>
    %c1_i32_57 = arith.constant 1 : i32
    %122 = tpu.dynamic_rotate %97 by %c1_i32_57 dim 1 : vector<32x256xf32>, i32 -> vector<32x256xf32>
    %123 = vector.broadcast %20 : vector<1x256xf32> to vector<32x256xf32>
    %124 = arith.mulf %122, %123 : vector<32x256xf32>
    %c3_58 = arith.constant 3 : index
    %c0_59 = arith.constant 0 : index
    %c0_60 = arith.constant 0 : index
    %125 = vector.load %arg3[%c3_58, %c0_59, %c0_60] : memref<9x32x32xf32, #tpu.memory_space<vmem>>, vector<1x32x32xf32>
    %126 = vector.shape_cast %125 : vector<1x32x32xf32> to vector<32x32xf32>
    %cst_61 = arith.constant dense<0.000000e+00> : vector<32x256xf32>
    %127 = tpu.matmul %126, %124, %cst_61 {dimension_numbers = #tpu.dot_dimension_numbers<[1], [0], [0], [1], [0, 0, 1, 1], [], []>} : vector<32x32xf32>, vector<32x256xf32>, vector<32x256xf32> -> vector<32x256xf32>
    %128 = arith.addf %121, %127 : vector<32x256xf32>
    %c255_i32_62 = arith.constant 255 : i32
    %129 = tpu.dynamic_rotate %97 by %c255_i32_62 dim 1 : vector<32x256xf32>, i32 -> vector<32x256xf32>
    %130 = vector.broadcast %22 : vector<1x256xf32> to vector<32x256xf32>
    %131 = arith.mulf %129, %130 : vector<32x256xf32>
    %c5_63 = arith.constant 5 : index
    %c0_64 = arith.constant 0 : index
    %c0_65 = arith.constant 0 : index
    %132 = vector.load %arg3[%c5_63, %c0_64, %c0_65] : memref<9x32x32xf32, #tpu.memory_space<vmem>>, vector<1x32x32xf32>
    %133 = vector.shape_cast %132 : vector<1x32x32xf32> to vector<32x32xf32>
    %cst_66 = arith.constant dense<0.000000e+00> : vector<32x256xf32>
    %134 = tpu.matmul %133, %131, %cst_66 {dimension_numbers = #tpu.dot_dimension_numbers<[1], [0], [0], [1], [0, 0, 1, 1], [], []>} : vector<32x32xf32>, vector<32x256xf32>, vector<32x256xf32> -> vector<32x256xf32>
    %135 = arith.addf %128, %134 : vector<32x256xf32>
    %c241_i32_67 = arith.constant 241 : i32
    %136 = tpu.dynamic_rotate %97 by %c241_i32_67 dim 1 : vector<32x256xf32>, i32 -> vector<32x256xf32>
    %137 = vector.broadcast %25 : vector<1x256xf32> to vector<32x256xf32>
    %138 = arith.mulf %136, %137 : vector<32x256xf32>
    %c6_68 = arith.constant 6 : index
    %c0_69 = arith.constant 0 : index
    %c0_70 = arith.constant 0 : index
    %139 = vector.load %arg3[%c6_68, %c0_69, %c0_70] : memref<9x32x32xf32, #tpu.memory_space<vmem>>, vector<1x32x32xf32>
    %140 = vector.shape_cast %139 : vector<1x32x32xf32> to vector<32x32xf32>
    %cst_71 = arith.constant dense<0.000000e+00> : vector<32x256xf32>
    %141 = tpu.matmul %140, %138, %cst_71 {dimension_numbers = #tpu.dot_dimension_numbers<[1], [0], [0], [1], [0, 0, 1, 1], [], []>} : vector<32x32xf32>, vector<32x256xf32>, vector<32x256xf32> -> vector<32x256xf32>
    %142 = arith.addf %135, %141 : vector<32x256xf32>
    %c240_i32_72 = arith.constant 240 : i32
    %143 = tpu.dynamic_rotate %97 by %c240_i32_72 dim 1 : vector<32x256xf32>, i32 -> vector<32x256xf32>
    %144 = vector.broadcast %27 : vector<1x256xf32> to vector<32x256xf32>
    %145 = arith.mulf %143, %144 : vector<32x256xf32>
    %c7_73 = arith.constant 7 : index
    %c0_74 = arith.constant 0 : index
    %c0_75 = arith.constant 0 : index
    %146 = vector.load %arg3[%c7_73, %c0_74, %c0_75] : memref<9x32x32xf32, #tpu.memory_space<vmem>>, vector<1x32x32xf32>
    %147 = vector.shape_cast %146 : vector<1x32x32xf32> to vector<32x32xf32>
    %cst_76 = arith.constant dense<0.000000e+00> : vector<32x256xf32>
    %148 = tpu.matmul %147, %145, %cst_76 {dimension_numbers = #tpu.dot_dimension_numbers<[1], [0], [0], [1], [0, 0, 1, 1], [], []>} : vector<32x32xf32>, vector<32x256xf32>, vector<32x256xf32> -> vector<32x256xf32>
    %149 = arith.addf %142, %148 : vector<32x256xf32>
    %c239_i32_77 = arith.constant 239 : i32
    %150 = tpu.dynamic_rotate %97 by %c239_i32_77 dim 1 : vector<32x256xf32>, i32 -> vector<32x256xf32>
    %151 = vector.broadcast %30 : vector<1x256xf32> to vector<32x256xf32>
    %152 = arith.mulf %150, %151 : vector<32x256xf32>
    %c8_78 = arith.constant 8 : index
    %c0_79 = arith.constant 0 : index
    %c0_80 = arith.constant 0 : index
    %153 = vector.load %arg3[%c8_78, %c0_79, %c0_80] : memref<9x32x32xf32, #tpu.memory_space<vmem>>, vector<1x32x32xf32>
    %154 = vector.shape_cast %153 : vector<1x32x32xf32> to vector<32x32xf32>
    %cst_81 = arith.constant dense<0.000000e+00> : vector<32x256xf32>
    %155 = tpu.matmul %154, %152, %cst_81 {dimension_numbers = #tpu.dot_dimension_numbers<[1], [0], [0], [1], [0, 0, 1, 1], [], []>} : vector<32x32xf32>, vector<32x256xf32>, vector<32x256xf32> -> vector<32x256xf32>
    %156 = arith.addf %149, %155 : vector<32x256xf32>
    %157 = vector.broadcast %32 : vector<32x1xf32> to vector<32x256xf32>
    %158 = arith.addf %156, %157 : vector<32x256xf32>
    %c0_82 = arith.constant 0 : index
    %c0_83 = arith.constant 0 : index
    %c0_84 = arith.constant 0 : index
    %159 = vector.load %arg1[%c0_82, %c0_83, %c0_84] : memref<1x32x256xf32, #tpu.memory_space<vmem>>, vector<1x32x256xf32>
    %160 = vector.shape_cast %159 : vector<1x32x256xf32> to vector<32x256xf32>
    %161 = arith.addf %158, %160 : vector<32x256xf32>
    %c0_85 = arith.constant 0 : index
    %c0_86 = arith.constant 0 : index
    %c0_87 = arith.constant 0 : index
    %162 = vector.load %arg6[%c0_85, %c0_86, %c0_87] : memref<1x32x256xf32, #tpu.memory_space<vmem>>, vector<1x32x256xf32>
    %163 = vector.shape_cast %162 : vector<1x32x256xf32> to vector<32x256xf32>
    %164 = vector.shape_cast %161 : vector<32x256xf32> to vector<1x32x256xf32>
    tpu.vector_store %arg6[%c0_85, %c0_86, %c0_87], %164 {strides = array<i32>} : memref<1x32x256xf32, #tpu.memory_space<vmem>>, vector<1x32x256xf32>,
    return
  }
  func.func @transform_0(%arg0: i32) -> (i32, i32, i32) {
    %c0_i32 = arith.constant 0 : i32
    %c0_i32_0 = arith.constant 0 : i32
    %c0_i32_1 = arith.constant 0 : i32
    return %arg0, %c0_i32, %c0_i32_0 : i32, i32, i32
  }
  func.func @transform_1(%arg0: i32) -> (i32, i32, i32) {
    %c0_i32 = arith.constant 0 : i32
    %c0_i32_0 = arith.constant 0 : i32
    %c0_i32_1 = arith.constant 0 : i32
    %c0_i32_2 = arith.constant 0 : i32
    return %c0_i32, %c0_i32_0, %c0_i32_1 : i32, i32, i32
  }
  func.func @transform_2(%arg0: i32) -> (i32, i32, i32) {
    %c0_i32 = arith.constant 0 : i32
    %c0_i32_0 = arith.constant 0 : i32
    %c0_i32_1 = arith.constant 0 : i32
    %c0_i32_2 = arith.constant 0 : i32
    return %c0_i32, %c0_i32_0, %c0_i32_1 : i32, i32, i32
  }
  func.func @transform_3(%arg0: i32) -> (i32, i32) {
    %c0_i32 = arith.constant 0 : i32
    %c0_i32_0 = arith.constant 0 : i32
    %c0_i32_1 = arith.constant 0 : i32
    return %c0_i32, %c0_i32_0 : i32, i32
  }
  func.func @transform_4(%arg0: i32) -> (i32, i32) {
    %c0_i32 = arith.constant 0 : i32
    %c0_i32_0 = arith.constant 0 : i32
    %c0_i32_1 = arith.constant 0 : i32
    return %c0_i32, %c0_i32_0 : i32, i32
  }
  func.func @transform_5(%arg0: i32) -> (i32, i32, i32) {
    %c0_i32 = arith.constant 0 : i32
    %c0_i32_0 = arith.constant 0 : i32
    %c0_i32_1 = arith.constant 0 : i32
    return %arg0, %c0_i32, %c0_i32_0 : i32, i32, i32
  }
}

</mosaic_0001>

<bundles_post_ra>
// kernel: tpu_custom_call.1
= control target key start
LH: loop header
LB: loop body
LE: loop exit
PB: predicated region body
PF: predicated region fallthrough
CT: control target
= control target key end

     0   :  { %10 = vsyncpa [#allocation3], 0  ;;  %s4950_s0 = inlined_call_operand.hbm [shape: f32[2,32,256], index: 0, kind: input, shape index: {}]   ;;  %s4951_s1 = inlined_call_operand.hbm [shape: f32[9,32,32], index: 1, kind: input, shape index: {}]   ;;  %s4952_s2 = inlined_call_operand.hbm [shape: f32[9,32,32], index: 2, kind: input, shape index: {}]   ;;  %s4953_s3 = inlined_call_operand.vmem [shape: f32[32,1], index: 3, kind: input, shape index: {}]   ;;  %s4954_s4 = inlined_call_operand.vmem [shape: f32[32,1], index: 4, kind: input, shape index: {}]   ;;  %s4955_s5 = inlined_call_operand.hbm [shape: f32[2,32,256], index: 5, kind: output, shape index: {}]  }
   0x1   :  { %12 = vsyncpa [#allocation3 + $0x1], 0 }
   0x2   :  { %13 = vsyncpa [#allocation6], 0 }
   0x3   :  { %14 = vsyncpa [#allocation4], 0 }
   0x4   :  { %16 = vsyncpa [#allocation4 + $0x1], 0  ;;  %s3743_s18 = smov 0   ;;  %s3745_s19 = smov 0  }
   0x5   :  { %s3747_s20 = smov 0   ;;  %s3749_s21 = smov 0  }
   0x6 LB: > { %s3764_s22 = sadd.s32 4294967295, %s3692_s21   ;;  %s3066_s23 = sadd.s32 4294967294, %s3692_s21   ;;  %s3692_s21 = sphi %s3749_s21, %s4983_s21   ;;  %s3688_s20 = sphi %s3747_s20, %s4982_s20   ;;  %s3684_s19 = sphi %s3745_s19, %s4981_s19   ;;  %s3680_s18 = sphi %s3743_s18, %s4980_s18  }
   0x7   : > { %p42_p0 = scmp.ne.s32.totalorder %s3684_s19, %s3680_s18  ;;  %p4956_p1 = scmp.eq.s32.totalorder %s3764_s22, 0 }
   0x8   : > { %p156_p3 = scmp.eq.s32.totalorder %s3066_s23, 1  ;;  %p3067_p5 = scmp.ge.s32.totalorder %s3692_s21, 1 }
   0x9   : > { %p3773_p4 = por %p4956_p1, %p42_p0  ;;  %p163_p7 = scmp.lt.s32.totalorder %s3692_s21, 3 }
   0xa   : > { %p3778_p6 = por %p156_p3, %p42_p0  ;;  %s3694_s27 = smov [#allocation5]  }
   0xb   : > { %s4959_s24 = scalar_select %p3773_p4, 1, 0 }
   0xc   : > { %s4960_s25 = scalar_select %p3778_p6, 1, 0 }
   0xd   : > { %p3783_p8 = pnand %p3067_p5, %p163_p7  ;;  %s175_s28 = sshll.u32 %s3694_s27, 4  ;;  %s3787_s28 = int_to_ptr.vmem [resolvable:$true] %s175_s28 }
   0xe   : > { %s3695_s30 = smov [#allocation7]   ;;  %s3536_s9 = scalar_lea.hbm %s4951_s1, 4608 }
   0xf   : > { %p3456_p9 = pneg %p3783_p8  ;;  %s188_s6 = sshll.u32 %s3695_s30, 4  ;;  %s3798_s6 = int_to_ptr.vmem [resolvable:$true] %s188_s6 }
  0x10   : > { %p3537_p12 = scmp.ne.s32.totalorder %s4951_s1, %s3536_s9  ;;  %p3543_p5 = scmp.lt.u32.totalorder %s3536_s9, %s4951_s1 }
  0x11   : > { %p3794_p11 = pnand %p3456_p9, %p4956_p1 }
  0x13   : > { %p3538_p13 = pneg %p3794_p11 }
  0x15   : > { %p3539_p0 = pnand %p3538_p13, %p3537_p12 }
  0x17   : > { %p3540_p3 = pneg %p3539_p0 }
  0x19   : > { %p3545_p7 = pnand %p3543_p5, %p3540_p3 }
  0x1b   : > { %3548 = shalt.err (!%p3545_p7)
}
  0x1c   : > { %s3549_s14 = scalar_lea.vmem %s3787_s28, 4608  ;;  %p3557_p2 = scmp.lt.s32.totalorder %s3787_s28, %s3787_s28 }
  0x1d   : > { %p3550_p9 = scmp.ne.s32.totalorder %s3787_s28, %s3549_s14  ;;  %p3558_p12 = scmp.lt.s32.totalorder %s3549_s14, %s3549_s14 }
  0x1f   : > { %p3552_p10 = pnand %p3550_p9, %p3538_p13  ;;  %p3559_p0 = por %p3558_p12, %p3557_p2 }
  0x21   : > { %p3553_p1 = pneg %p3552_p10 }
  0x23   : > { %p3560_p6 = pnand %p3559_p0, %p3553_p1 }
  0x25   : > { %3563 = shalt.err (!%p3560_p6)
}
  0x26   : > { %s3696_s15 = smov 128   ;;  %s3697_s16 = smov 8  }
  0x27   : > { %3459 = dma.hbm_to_vmem [thread:$0]  (!%p3794_p11), %s4951_s1, 4608, %s3787_s28, [#allocation6], %s3696_s15, %s3696_s15, %s3697_s16  }
  0x28   : > { %s3564_s7 = scalar_lea.hbm %s4952_s2, 4608 }
  0x29   : > { %p3565_p2 = scmp.ne.s32.totalorder %s4952_s2, %s3564_s7  ;;  %p3571_p10 = scmp.lt.u32.totalorder %s3564_s7, %s4952_s2 }
  0x2b   : > { %p3567_p1 = pnand %p3565_p2, %p3538_p13 }
  0x2d   : > { %p3568_p6 = pneg %p3567_p1 }
  0x2f   : > { %p3573_p3 = pnand %p3571_p10, %p3568_p6 }
  0x31   : > { %3576 = shalt.err (!%p3573_p3)
}
  0x32   : > { %s3577_s28 = scalar_lea.vmem %s3798_s6, 4608  ;;  %p3585_p12 = scmp.lt.s32.totalorder %s3798_s6, %s3798_s6 }
  0x33   : > { %p3578_p5 = scmp.ne.s32.totalorder %s3798_s6, %s3577_s28  ;;  %p3586_p0 = scmp.lt.s32.totalorder %s3577_s28, %s3577_s28 }
  0x35   : > { %p3580_p7 = pnand %p3578_p5, %p3538_p13  ;;  %p3587_p2 = por %p3586_p0, %p3585_p12 }
  0x37   : > { %p3581_p9 = pneg %p3580_p7 }
  0x39   : > { %p3588_p1 = pnand %p3587_p2, %p3581_p9 }
  0x3b   : > { %3591 = shalt.err (!%p3588_p1)
}
  0x3c   : > { %3462 = dma.hbm_to_vmem [thread:$0]  (!%p3794_p11), %s4952_s2, 4608, %s3798_s6, [#allocation6], %s3696_s15, %s3696_s15, %s3697_s16  }
  0x3d   : > { %s3853_s14 = sadd.s32 1, %s3692_s21   ;;  %s29_s29 = sadd.s32 1, %s3688_s20 }
  0x3e   : > { %s26_s17 = ssub.s32 %s3692_s21, %s3853_s14  ;;  %p36_p13 = scmp.ne.s32.totalorder %s3688_s20, %s3684_s19 }
  0x3f   : > { %p27_p6 = scmp.eq.s32.totalorder %s26_s17, 0  ;;  %p37_p10 = scmp.eq.s32.totalorder %s3692_s21, 0 }
  0x40   : > { %p4963_p3 = scmp.eq.s32.totalorder %s3764_s22, 1  ;;  %p3473_p7 = scmp.lt.s32.totalorder %s3692_s21, 2 }
  0x41   : > { %s3869_s27 = scalar_select %p27_p6, %s3688_s20, %s29_s29  }
  0x42   : > { %p3863_p5 = por %p4963_p3, %p36_p13  ;;  %p38_p9 = por %p37_p10, %p36_p13 }
  0x43   : > { %s208_s30 = sand.u32 1, %s3688_s20   ;;  %s3170_s6 = sshll.u32 %s3692_s21, 10 }
  0x44   : > { %s4964_s23 = scalar_select %p3863_p5, 1, 0 }
  0x45   : > { %s3071_s7 = sshll.u32 %s208_s30, 6  ;;  %s3876_s8 = scalar_lea.hbm %s4950_s0, %s3170_s6 }
  0x46   : > { %s212_s9 = scalar_lea.vmem [#allocation2], %s3071_s7  ;;  %p3880_p11 = pnand %p3473_p7, %p38_p9 }
  0x47   : > { %s219_s10 = sshll.u32 %s212_s9, 4  ;;  %s3884_s28 = scalar_lea.sflag [#allocation3], %s208_s30  ;;  %s3878_s10 = int_to_ptr.vmem [resolvable:$true] %s219_s10 }
  0x48   : > { %s3592_s12 = scalar_lea.hbm %s3876_s8, 1024  ;;  %p3594_p0 = pneg %p3880_p11 }
  0x49   : > { %p3593_p12 = scmp.ne.s32.totalorder %s3876_s8, %s3592_s12  ;;  %s3597_s17 = scalar_lea.hbm %s4950_s0, 2048 }
  0x4a   : > { %p3598_p13 = scmp.lt.u32.totalorder %s3876_s8, %s4950_s0  ;;  %p3599_p6 = scmp.lt.u32.totalorder %s3597_s17, %s3592_s12 }
  0x4b   : > { %p3595_p2 = pnand %p3594_p0, %p3593_p12  ;;  %p3601_p3 = scmp.lt.u32.totalorder %s3592_s12, %s3876_s8 }
  0x4c   : > { %p3600_p10 = por %p3599_p6, %p3598_p13 }
  0x4d   : > { %p3596_p1 = pneg %p3595_p2 }
  0x4e   : > { %p3602_p7 = por %p3601_p3, %p3600_p10 }
  0x50   : > { %p3603_p9 = pnand %p3602_p7, %p3596_p1 }
  0x52   : > { %3606 = shalt.err (!%p3603_p9)
}
  0x53   : > { %s3607_s30 = scalar_lea.vmem %s3878_s10, 1024  ;;  %s3698_s15 = smov [#allocation2]  }
  0x54   : > { %p3608_p12 = scmp.ne.s32.totalorder %s3878_s10, %s3607_s30  ;;  %s3612_s16 = sshll.u32 %s3698_s15, 4  ;;  %s3613_s16 = int_to_ptr.vmem [resolvable:$false] %s3612_s16 }
  0x55   : > { %s3614_s9 = scalar_lea.vmem %s3613_s16, 2048  ;;  %p3615_p4 = scmp.lt.s32.totalorder %s3878_s10, %s3613_s16 }
  0x56   : > { %p3610_p2 = pnand %p3608_p12, %p3594_p0  ;;  %p3616_p13 = scmp.lt.s32.totalorder %s3614_s9, %s3607_s30 }
  0x58   : > { %p3611_p5 = pneg %p3610_p2  ;;  %p3617_p6 = por %p3616_p13, %p3615_p4 }
  0x5a   : > { %p3618_p10 = pnand %p3617_p6, %p3611_p5 }
  0x5c   : > { %3621 = shalt.err (!%p3618_p10)
}
  0x5d   : > { %s3699_s12 = smov 256   ;;  %s3700_s13 = smov 16  }
  0x5e   : > { %3466 = dma.hbm_to_vmem [thread:$0]  (!%p3880_p11), %s3876_s8, 1024, %s3878_s10, %s3884_s28, %s3699_s12, %s3699_s12, %s3700_s13  }
  0x5f   : > { %231 = sbr.rel (%p3783_p8) target bundleno = 1100 (0x44c), region = 40  ;;  %s3915_s29 = sand.u32 (!%p3783_p8), 1, %s3684_s19  }
  0x60   : > { %s3075_s17 = sshll.u32 (!%p3783_p8), %s3915_s29, 6  ;;  %s234_s7 = scalar_lea.sflag (!%p3783_p8), [#allocation3], %s3915_s29 }
  0x61   : > { %s3921_s6 = scalar_lea.vmem (!%p3783_p8), [#allocation2], %s3075_s17  ;;  %p4966_p4 = scmp.ne.s32.totalorder (!%p3783_p8), %s4959_s24, 0 }
  0x66   : > { %3667 = dma.done.wait (%p4966_p4), %s234_s7, 1024  }
  0x67   : > { %3669 = vsyncadd (%p4966_p4), %s234_s7, 4294966272  ;;  %p4967_p5 = scmp.eq.s32.totalorder %s3764_s22, 0 }
  0x69   : > { %3671 = dma.done.wait (%p4967_p5), [#allocation6], 9216   ;;  %p4968_p8 = pmov %p4967_p5 }
  0x6a   : > { %v3701_v0 = vmov 0.0   ;;  %v3934_v1 = vld [vmem:[%s3921_s6 + $0x8] sm:$0xff]  ;;  %v3937_v2 = vld [vmem:[%s3921_s6] sm:$0xff]  ;;  %s3702_s24 = smov 17   ;;  %v3944_v3 = vld [vmem:[%s3921_s6 + $0x18] sm:$0xff]  ;;  %s3703_s26 = smov 16   ;;  %v272_v9 = vlaneseq }
  0x6b   : > { %3673 = vsyncadd (%p4968_p8), [#allocation6], 4294958080  ;;  %460 = vmatprep.mubr.f32.mxu0 %v3701_v0  ;;  %1768 = vmatprep.mubr.f32.mxu1 %v3701_v0  ;;  %v3947_v4 = vld [vmem:[%s3921_s6 + $0x10] sm:$0xff]  ;;  %v3957_v6 = vld [vmem:[%s3921_s6 + $0x20] sm:$0xff]  ;;  %s3704_s8 = smov 15   ;;  %s3705_s10 = smov 1   ;;  %v3180_v46 = vpack.c.bf16 %v3944_v3, %v3934_v1 }
  0x6c   : > { %354 = vrot.lane.b32.xlu1 %v3934_v1, %s3702_s24  ;;  %346 = vrot.lane.b32.xlu0 %v3937_v2, %s3702_s24  ;;  %v3954_v5 = vld [vmem:[%s3921_s6 + $0x30] sm:$0xff]  ;;  %v3964_v7 = vld [vmem:[%s3921_s6 + $0x38] sm:$0xff]  ;;  %s3706_s11 = smov 127   ;;  %s3707_s28 = smov 113   ;;  %v4061_v10 = vand.u32 127, %v272_v9  ;;  %v379_v49 = vld [vmem:[#allocation5] sm:$0xff]  ;;  %v3182_v50 = vpack.c.bf16 %v3947_v4, %v3937_v2 }
  0x6d   : > { %v3967_v8 = vld [vmem:[%s3921_s6 + $0x28] sm:$0xff]  ;;  %s3708_s30 = smov 112   ;;  %s3709_s15 = smov 111   ;;  %vm383_vm6 = vcmask 261120   ;;  %v3186_v57 = vpack.c.bf16 %v3954_v5, %v3957_v6  ;;  %v381_v61 = vld [vmem:[#allocation5 + $0x10] sm:$0xff] }
  0x6e   : > { %v4068_v11 = vadd.s32 128, %v4061_v10  ;;  %v275_v12 = vand.u32 15, %v4061_v10  ;;  %vm281_vm1 = vcmp.ge.s32.totalorder %v4061_v10, 16  ;;  %vm362_vm2 = vcmp.lt.s32.totalorder %v4061_v10, 17  ;;  %v380_v56 = vld [vmem:[#allocation5 + $0x8] sm:$0xff]  ;;  %s4882_s7 = scalar_lea.vmem [#allocation8], %s3075_s17 }
  0x6f   : > { %vm602_vm5 = vcmp.lt.s32.totalorder %v4061_v10, 16  ;;  %v3184_v53 = vpack.c.bf16 %v3964_v7, %v3967_v8  ;;  %v4162_v62 = vsel %vm281_vm1, 1.0, %v3701_v0  ;;  %vm749_vm8 = vcmp.lt.s32.totalorder %v4061_v10, 15  ;;  %s2974_s17 = sshll.u32 %s4882_s7, 4  ;;  %s3171_s16 = sshll.u32 %s3764_s22, 10  ;;  %s4896_s17 = int_to_ptr.vmem [resolvable:$true] %s2974_s17 }
  0x70   : > { %356 = vrot.lane.b32.xlu1 %v3944_v3, %s3702_s24  ;;  %348 = vrot.lane.b32.xlu0 %v3947_v4, %s3702_s24  ;;  %v276_v13 = vand.u32 15, %v4068_v11  ;;  %vm4078_vm0 = vcmp.gt.s32.totalorder %v275_v12, 0  ;;  %vm4212_vm9 = vcmp.lt.s32.totalorder %v275_v12, 15  ;;  %vm896_vm11 = vcmp.lt.s32.totalorder %v4061_v10, 1  ;;  %s3622_s22 = scalar_lea.vmem %s4896_s17, 1024  ;;  %p4977_p0 = scmp.ne.s32.totalorder %s4964_s23, 0 }
  0x71   : > { %vm285_vm4 = vmand %vm4078_vm0, %vm281_vm1  ;;  %vm1043_vm12 = vcmp.lt.s32.totalorder %v4061_v10, 127  ;;  %vm284_vm13 = vcmp.lt.s32.totalorder %v4068_v11, 240  ;;  %vm1190_vm15 = vcmp.lt.s32.totalorder %v4061_v10, 113  ;;  %p3623_p11 = scmp.ne.s32.totalorder %s4896_s17, %s3622_s22 }
  0x72   : > { %vm4090_vm3 = vcmp.gt.s32.totalorder %v276_v13, 0  ;;  %v4112_v21 = vsel %vm285_vm4, 1.0, %v3701_v0  ;;  %vm4178_vm7 = vcmp.lt.s32.totalorder %v276_v13, 15  ;;  %v325_v13 = vld [vmem:[%s4953_s3] sm:$0xff]  ;;  %vm295_vm10 = vmand %vm4212_vm9, %vm281_vm1 }
  0x73   : > { %v4105_v18 = vsel %vm4090_vm3, 1.0, %v3701_v0  ;;  %vm310_vm14 = vmand %vm4090_vm3, %vm284_vm13  ;;  %vm1484_vm3 = vcmp.lt.s32.totalorder %v4061_v10, 111  ;;  %p3624_p1 = pnand %p3623_p11, %p4977_p0 }
  0x74   : > { %352 = vrot.lane.b32.xlu1 %v3954_v5, %s3702_s24  ;;  %350 = vrot.lane.b32.xlu0 %v3957_v6, %s3702_s24  ;;  %vm320_vm1 = vmand %vm4178_vm7, %vm284_vm13 }
  0x75   : > { %p3625_p3 = pneg %p3624_p1 }
  0x78   : > { %360 = vrot.lane.b32.xlu1 %v3964_v7, %s3702_s24  ;;  %358 = vrot.lane.b32.xlu0 %v3967_v8, %s3702_s24 }
  0x7c   : > { %588 = vrot.lane.b32.xlu1 %v3947_v4, %s3703_s26  ;;  %586 = vrot.lane.b32.xlu0 %v3937_v2, %s3703_s26 }
  0x80   : > { %596 = vrot.lane.b32.xlu1 %v3944_v3, %s3703_s26  ;;  %594 = vrot.lane.b32.xlu0 %v3934_v1, %s3703_s26 }
  0x84   : > { %592 = vrot.lane.b32.xlu1 %v3954_v5, %s3703_s26  ;;  %590 = vrot.lane.b32.xlu0 %v3957_v6, %s3703_s26 }
  0x88   : > { %600 = vrot.lane.b32.xlu1 %v3964_v7, %s3703_s26  ;;  %598 = vrot.lane.b32.xlu0 %v3967_v8, %s3703_s26 }
  0x8c   : > { %735 = vrot.lane.b32.xlu1 %v3947_v4, %s3704_s8  ;;  %733 = vrot.lane.b32.xlu0 %v3937_v2, %s3704_s8 }
  0x90   : > { %743 = vrot.lane.b32.xlu1 %v3944_v3, %s3704_s8  ;;  %741 = vrot.lane.b32.xlu0 %v3934_v1, %s3704_s8 }
  0x94   : > { %739 = vrot.lane.b32.xlu1 %v3954_v5, %s3704_s8  ;;  %737 = vrot.lane.b32.xlu0 %v3957_v6, %s3704_s8 }
  0x98   : > { %747 = vrot.lane.b32.xlu1 %v3964_v7, %s3704_s8  ;;  %745 = vrot.lane.b32.xlu0 %v3967_v8, %s3704_s8 }
  0x9c   : > { %882 = vrot.lane.b32.xlu1 %v3947_v4, %s3705_s10  ;;  %880 = vrot.lane.b32.xlu0 %v3937_v2, %s3705_s10 }
  0xa0   : > { %890 = vrot.lane.b32.xlu1 %v3944_v3, %s3705_s10  ;;  %888 = vrot.lane.b32.xlu0 %v3934_v1, %s3705_s10 }
  0xa4   : > { %886 = vrot.lane.b32.xlu1 %v3954_v5, %s3705_s10  ;;  %884 = vrot.lane.b32.xlu0 %v3957_v6, %s3705_s10 }
  0xa8   : > { %894 = vrot.lane.b32.xlu1 %v3964_v7, %s3705_s10  ;;  %892 = vrot.lane.b32.xlu0 %v3967_v8, %s3705_s10 }
  0xac   : > { %1029 = vrot.lane.b32.xlu1 %v3947_v4, %s3706_s11  ;;  %1027 = vrot.lane.b32.xlu0 %v3937_v2, %s3706_s11 }
  0xb0   : > { %1037 = vrot.lane.b32.xlu1 %v3944_v3, %s3706_s11  ;;  %1035 = vrot.lane.b32.xlu0 %v3934_v1, %s3706_s11 }
  0xb4   : > { %1033 = vrot.lane.b32.xlu1 %v3954_v5, %s3706_s11  ;;  %1031 = vrot.lane.b32.xlu0 %v3957_v6, %s3706_s11 }
  0xb8   : > { %1041 = vrot.lane.b32.xlu1 %v3964_v7, %s3706_s11  ;;  %1039 = vrot.lane.b32.xlu0 %v3967_v8, %s3706_s11 }
  0xbc   : > { %1176 = vrot.lane.b32.xlu1 %v3947_v4, %s3707_s28  ;;  %1174 = vrot.lane.b32.xlu0 %v3937_v2, %s3707_s28 }
  0xc0   : > { %1184 = vrot.lane.b32.xlu1 %v3944_v3, %s3707_s28  ;;  %1182 = vrot.lane.b32.xlu0 %v3934_v1, %s3707_s28 }
  0xc4   : > { %1180 = vrot.lane.b32.xlu1 %v3954_v5, %s3707_s28  ;;  %1178 = vrot.lane.b32.xlu0 %v3957_v6, %s3707_s28 }
  0xc8   : > { %1188 = vrot.lane.b32.xlu1 %v3964_v7, %s3707_s28  ;;  %1186 = vrot.lane.b32.xlu0 %v3967_v8, %s3707_s28 }
  0xcc   : > { %1323 = vrot.lane.b32.xlu1 %v3947_v4, %s3708_s30  ;;  %1321 = vrot.lane.b32.xlu0 %v3937_v2, %s3708_s30 }
  0xd0   : > { %1331 = vrot.lane.b32.xlu1 %v3944_v3, %s3708_s30  ;;  %1329 = vrot.lane.b32.xlu0 %v3934_v1, %s3708_s30 }
  0xd4   : > { %1327 = vrot.lane.b32.xlu1 %v3954_v5, %s3708_s30  ;;  %1325 = vrot.lane.b32.xlu0 %v3957_v6, %s3708_s30 }
  0xd8   : > { %1335 = vrot.lane.b32.xlu1 %v3964_v7, %s3708_s30  ;;  %1333 = vrot.lane.b32.xlu0 %v3967_v8, %s3708_s30 }
  0xdc   : > { %1470 = vrot.lane.b32.xlu1 %v3947_v4, %s3709_s15  ;;  %1468 = vrot.lane.b32.xlu0 %v3937_v2, %s3709_s15 }
  0xde   : > { %v355_v16 = vpop.permute.xlu1 %354  ;;  %v347_v17 = vpop.permute.xlu0 %346 }
  0xdf   : > { %v363_v19 = vsel %vm362_vm2, %v347_v17, %v355_v16  ;;  %v367_v20 = vsel %vm362_vm2, %v355_v16, %v347_v17 }
  0xe0   : > { %1478 = vrot.lane.b32.xlu1 %v3944_v3, %s3709_s15  ;;  %1476 = vrot.lane.b32.xlu0 %v3934_v1, %s3709_s15  ;;  %v372_v26 = vmul.f32 %v4105_v18, %v363_v19  ;;  %v371_v28 = vmul.f32 %v4112_v21, %v367_v20 }
  0xe2   : > { %v357_v22 = vpop.permute.xlu1 %356  ;;  %v349_v23 = vpop.permute.xlu0 %348 }
  0xe3   : > { %v368_v24 = vsel %vm362_vm2, %v357_v22, %v349_v23  ;;  %v364_v25 = vsel %vm362_vm2, %v349_v23, %v357_v22  ;;  %v326_v22 = vld [vmem:[%s4953_s3 + $0x8] sm:$0xff] }
  0xe4   : > { %v374_v27 = vmul.f32 %v4105_v18, %v364_v25  ;;  %v373_v29 = vmul.f32 %v4112_v21, %v368_v24  ;;  %1474 = vrot.lane.b32.xlu1 %v3954_v5, %s3709_s15  ;;  %1472 = vrot.lane.b32.xlu0 %v3957_v6, %s3709_s15  ;;  %v382_v6 = vld [vmem:[#allocation5 + $0x18] sm:$0xff] }
  0xe6   : > { %v353_v30 = vpop.permute.xlu1 %352  ;;  %v351_v31 = vpop.permute.xlu0 %350  ;;  %v3172_v32 = vpack.c.bf16 %v374_v27, %v372_v26  ;;  %v3174_v33 = vpack.c.bf16 %v373_v29, %v371_v28  ;;  %v342_v26 = vld [vmem:[#allocation5 + $0x80] sm:$0xff]  ;;  %v4200_v27 = vsel %vm4178_vm7, 1.0, %v3701_v0  ;;  %v3710_v28 = vmov 0  }
  0xe7   : > { %3527 = vset.pattern.permute.xlu1 %v3710_v28  ;;  %3526 = vset.pattern.permute.xlu0 %v3710_v28 }
  0xe8   : > { %3173 = vmatprep.subr.bf16.mxu0 %v3172_v32  ;;  %1482 = vrot.lane.b32.xlu1 %v3964_v7, %s3709_s15 }
  0xe9   : > { %3175 = vmatpush1.bf16.msra.mxu0 %v3174_v33  ;;  %1480 = vrot.lane.b32.xlu0 %v3967_v8, %s3709_s15 }
  0xea   : > { %v361_v34 = vpop.permute.xlu1 %360  ;;  %v359_v35 = vpop.permute.xlu0 %358 }
  0xeb   : > { %v366_v36 = vsel %vm362_vm2, %v353_v30, %v361_v34  ;;  %v370_v37 = vsel %vm362_vm2, %v361_v34, %v353_v30  ;;  %v365_v38 = vsel %vm362_vm2, %v351_v31, %v359_v35  ;;  %v369_v39 = vsel %vm362_vm2, %v359_v35, %v351_v31  ;;  %v327_v34 = vld [vmem:[%s4953_s3 + $0x10] sm:$0xff] }
  0xec   : > { %v377_v40 = vmul.f32 %v4112_v21, %v370_v37  ;;  %v378_v41 = vmul.f32 %v4105_v18, %v366_v36  ;;  %v375_v42 = vmul.f32 %v4112_v21, %v369_v39  ;;  %v376_v43 = vmul.f32 %v4105_v18, %v365_v38  ;;  %1622 = vperm.xlu1 %3527, %v326_v22   ;;  %v328_v38 = vld [vmem:[%s4953_s3 + $0x18] sm:$0xff] }
  0xed   : > { %1617 = vperm.xlu0 %3526, %v325_v13   ;;  %v622_v13 = vld [vmem:[#allocation5 + $0x30] sm:$0xff] }
  0xee   : > { %v3176_v44 = vpack.c.bf16 %v378_v41, %v376_v43  ;;  %v3178_v45 = vpack.c.bf16 %v377_v40, %v375_v42  ;;  %v589_v47 = vpop.permute.xlu1 %588  ;;  %v587_v48 = vpop.permute.xlu0 %586  ;;  %v343_v40 = vld [vmem:[#allocation5 + $0x88] sm:$0xff]  ;;  %v344_v43 = vld [vmem:[#allocation5 + $0x90] sm:$0xff] }
  0xf0   : > { %3177 = vmatprep.subr.bf16.mxu0 %v3176_v44  ;;  %1627 = vperm.xlu1 %3527, %v327_v34   ;;  %v4229_v44 = vsel %vm295_vm10, 1.0, %v3701_v0 }
  0xf1   : > { %3179 = vmatpush1.bf16.msra.mxu0 %v3178_v45  ;;  %1632 = vperm.xlu0 %3526, %v328_v38  }
  0xf2   : > { %3181 = vmatprep.subr.bf16.mxu0 %v3180_v46  ;;  %v597_v51 = vpop.permute.xlu1 %596  ;;  %v595_v52 = vpop.permute.xlu0 %594 }
  0xf3   : > { %v604_v54 = vsel %vm602_vm5, %v589_v47, %v597_v51  ;;  %v603_v55 = vsel %vm602_vm5, %v587_v48, %v595_v52  ;;  %v608_v63 = vsel %vm602_vm5, %v597_v51, %v589_v47  ;;  %v607_v1 = vsel %vm602_vm5, %v595_v52, %v587_v48 }
  0xf4   : > { %3093 = vmatmul.mubr.msk.f32.vlgmr.msra.gmra.mrb[0].mxu0 %vm383_vm6, %v379_v49  ;;  %v3188_v60 = vpack.c.bf16 %v604_v54, %v603_v55  ;;  %v613_v4 = vmul.f32 %v4162_v62, %v608_v63  ;;  %v611_v5 = vmul.f32 %v4162_v62, %v607_v1  ;;  %v620_v1 = vld [vmem:[#allocation5 + $0x20] sm:$0xff] }
  0xf5   : > { %3183 = vmatpush1.bf16.msra.mxu0 %v3182_v50  ;;  %466 = vmatprep.mubr.f32.mxu0 %v3701_v0 }
  0xf6   : > { %3185 = vmatprep.subr.bf16.mxu0 %v3184_v53  ;;  %v593_v58 = vpop.permute.xlu1 %592  ;;  %v591_v59 = vpop.permute.xlu0 %590  ;;  %v3190_v23 = vpack.c.bf16 %v613_v4, %v611_v5  ;;  %v345_v53 = vld [vmem:[#allocation5 + $0x98] sm:$0xff] }
  0xf8   : > { %3094 = vmatmul.mubr.msk.f32.gmra.mrb[2].mxu0 %vm383_vm6, %v380_v56 }
  0xf9   : > { %472 = vmatprep.mubr.f32.mxu0 %v3701_v0  ;;  %3187 = vmatpush1.bf16.msra.mxu0 %v3186_v57 }
  0xfa   : > { %3189 = vmatprep.subr.bf16.mxu0 %v3188_v60  ;;  %v601_v2 = vpop.permute.xlu1 %600  ;;  %v599_v3 = vpop.permute.xlu0 %598 }
  0xfb   : > { %v610_v7 = vsel %vm602_vm5, %v601_v2, %v593_v58  ;;  %v609_v8 = vsel %vm602_vm5, %v599_v3, %v591_v59  ;;  %v606_v19 = vsel %vm602_vm5, %v593_v58, %v601_v2  ;;  %v605_v20 = vsel %vm602_vm5, %v591_v59, %v599_v3 }
  0xfc   : > { %3095 = vmatmul.mubr.msk.f32.gmra.mrb[4].mxu0 %vm383_vm6, %v381_v61  ;;  %v617_v24 = vmul.f32 %v4162_v62, %v610_v7  ;;  %v615_v25 = vmul.f32 %v4162_v62, %v609_v8  ;;  %v3192_v29 = vpack.c.bf16 %v606_v19, %v605_v20 }
  0xfd   : > { %478 = vmatprep.mubr.f32.mxu0 %v3701_v0 }
  0xfe   : > { %v736_v9 = vpop.permute.xlu1 %735  ;;  %v734_v16 = vpop.permute.xlu0 %733  ;;  %v3194_v39 = vpack.c.bf16 %v617_v24, %v615_v25 }
 0x100   : > { %3096 = vmatmul.mubr.msk.f32.gmra.mrb[6].mxu0 %vm383_vm6, %v382_v6 }
 0x101   : > { %561 = vmatprep.mubr.f32.mxu0 %v3701_v0 }
 0x102   : > { %v744_v30 = vpop.permute.xlu1 %743  ;;  %v742_v31 = vpop.permute.xlu0 %741 }
 0x103   : > { %v751_v32 = vsel %vm749_vm8, %v736_v9, %v744_v30  ;;  %v750_v33 = vsel %vm749_vm8, %v734_v16, %v742_v31  ;;  %v755_v45 = vsel %vm749_vm8, %v744_v30, %v736_v9  ;;  %v754_v46 = vsel %vm749_vm8, %v742_v31, %v734_v16  ;;  %v621_v16 = vld [vmem:[#allocation5 + $0x28] sm:$0xff] }
 0x104   : > { %3097 = vmatmul.mubr.msk.f32.vlgmr.msra.gmra.mrb[0].mxu0 %vm383_vm6, %v342_v26  ;;  %v761_v36 = vmul.f32 %v4200_v27, %v751_v32  ;;  %v759_v37 = vmul.f32 %v4200_v27, %v750_v33  ;;  %v760_v51 = vmul.f32 %v4229_v44, %v755_v45  ;;  %v758_v52 = vmul.f32 %v4229_v44, %v754_v46  ;;  %v623_v32 = vld [vmem:[#allocation5 + $0x38] sm:$0xff] }
 0x105   : > { %3191 = vmatpush1.bf16.msra.mxu0 %v3190_v23  ;;  %567 = vmatprep.mubr.f32.mxu0 %v3701_v0  ;;  %v4267_v23 = vsel %vm4078_vm0, 1.0, %v3701_v0  ;;  %vm1337_vm0 = vcmp.lt.s32.totalorder %v4061_v10, 112  ;;  %v2659_v10 = vld [vmem:[#allocation7 + $0xf0] sm:$0xff] }
 0x106   : > { %3193 = vmatprep.subr.bf16.mxu0 %v3192_v29  ;;  %v740_v41 = vpop.permute.xlu1 %739  ;;  %v738_v42 = vpop.permute.xlu0 %737  ;;  %v3196_v12 = vpack.c.bf16 %v761_v36, %v759_v37  ;;  %v3198_v60 = vpack.c.bf16 %v760_v51, %v758_v52  ;;  %v768_v52 = vld [vmem:[#allocation5 + $0x48] sm:$0xff] }
 0x108   : > { %3098 = vmatmul.mubr.msk.f32.gmra.mrb[2].mxu0 %vm383_vm6, %v343_v40 }
 0x109   : > { %3195 = vmatpush1.bf16.msra.mxu0 %v3194_v39  ;;  %573 = vmatprep.mubr.f32.mxu0 %v3701_v0 }
 0x10a   : > { %3197 = vmatprep.subr.bf16.mxu0 %v3196_v12  ;;  %v748_v47 = vpop.permute.xlu1 %747  ;;  %v746_v48 = vpop.permute.xlu0 %745  ;;  %v767_v12 = vld [vmem:[#allocation5 + $0x40] sm:$0xff] }
 0x10b   : > { %v753_v49 = vsel %vm749_vm8, %v740_v41, %v748_v47  ;;  %v752_v50 = vsel %vm749_vm8, %v738_v42, %v746_v48  ;;  %v757_v54 = vsel %vm749_vm8, %v748_v47, %v740_v41  ;;  %v756_v56 = vsel %vm749_vm8, %v746_v48, %v738_v42 }
 0x10c   : > { %3099 = vmatmul.mubr.msk.f32.gmra.mrb[4].mxu0 %vm383_vm6, %v344_v43  ;;  %v765_v55 = vmul.f32 %v4200_v27, %v753_v49  ;;  %v763_v57 = vmul.f32 %v4200_v27, %v752_v50  ;;  %v764_v61 = vmul.f32 %v4229_v44, %v757_v54  ;;  %v762_v63 = vmul.f32 %v4229_v44, %v756_v56  ;;  %v769_v56 = vld [vmem:[#allocation5 + $0x50] sm:$0xff] }
 0x10d   : > { %579 = vmatprep.mubr.f32.mxu0 %v3701_v0 }
 0x10e   : > { %v883_v58 = vpop.permute.xlu1 %882  ;;  %v881_v59 = vpop.permute.xlu0 %880  ;;  %v3200_v2 = vpack.c.bf16 %v765_v55, %v763_v57  ;;  %v3202_v9 = vpack.c.bf16 %v764_v61, %v762_v63  ;;  %v4305_v57 = vsel %vm4212_vm9, 1.0, %v3701_v0 }
 0x110   : > { %3100 = vmatmul.mubr.msk.f32.gmra.mrb[6].mxu0 %vm383_vm6, %v345_v53 }
 0x111   : > { %700 = vmatprep.mubr.f32.mxu0 %v3701_v0 }
 0x112   : > { %v891_v3 = vpop.permute.xlu1 %890  ;;  %v889_v4 = vpop.permute.xlu0 %888 }
 0x113   : > { %v898_v5 = vsel %vm896_vm11, %v883_v58, %v891_v3  ;;  %v897_v6 = vsel %vm896_vm11, %v881_v59, %v889_v4  ;;  %v902_v24 = vsel %vm896_vm11, %v891_v3, %v883_v58  ;;  %v901_v25 = vsel %vm896_vm11, %v889_v4, %v881_v59  ;;  %v770_v3 = vld [vmem:[#allocation5 + $0x58] sm:$0xff] }
 0x114   : > { %3101 = vmatmul.mubr.msk.f32.vlgmr.msra.gmra.mrb[0].mxu0 %vm383_vm6, %v620_v1  ;;  %v908_v7 = vmul.f32 %v4105_v18, %v898_v5  ;;  %v906_v8 = vmul.f32 %v4105_v18, %v897_v6  ;;  %v907_v14 = vmul.f32 %v4267_v23, %v902_v24  ;;  %v905_v31 = vmul.f32 %v4267_v23, %v901_v25 }
 0x115   : > { %3199 = vmatpush1.bf16.msra.mxu0 %v3198_v60  ;;  %706 = vmatprep.mubr.f32.mxu0 %v3701_v0 }
 0x116   : > { %3201 = vmatprep.subr.bf16.mxu0 %v3200_v2  ;;  %v887_v19 = vpop.permute.xlu1 %886  ;;  %v885_v20 = vpop.permute.xlu0 %884  ;;  %v3204_v22 = vpack.c.bf16 %v908_v7, %v906_v8  ;;  %v3206_v40 = vpack.c.bf16 %v907_v14, %v905_v31  ;;  %v915_v31 = vld [vmem:[#allocation5 + $0x68] sm:$0xff] }
 0x118   : > { %3102 = vmatmul.mubr.msk.f32.gmra.mrb[2].mxu0 %vm383_vm6, %v621_v16 }
 0x119   : > { %3203 = vmatpush1.bf16.msra.mxu0 %v3202_v9  ;;  %712 = vmatprep.mubr.f32.mxu0 %v3701_v0 }
 0x11a   : > { %3205 = vmatprep.subr.bf16.mxu0 %v3204_v22  ;;  %v895_v26 = vpop.permute.xlu1 %894  ;;  %v893_v28 = vpop.permute.xlu0 %892  ;;  %v914_v22 = vld [vmem:[#allocation5 + $0x60] sm:$0xff] }
 0x11b   : > { %v900_v29 = vsel %vm896_vm11, %v887_v19, %v895_v26  ;;  %v899_v30 = vsel %vm896_vm11, %v885_v20, %v893_v28  ;;  %v904_v33 = vsel %vm896_vm11, %v895_v26, %v887_v19  ;;  %v903_v36 = vsel %vm896_vm11, %v893_v28, %v885_v20 }
 0x11c   : > { %3103 = vmatmul.mubr.msk.f32.gmra.mrb[4].mxu0 %vm383_vm6, %v622_v13  ;;  %v912_v34 = vmul.f32 %v4105_v18, %v900_v29  ;;  %v910_v37 = vmul.f32 %v4105_v18, %v899_v30  ;;  %v911_v41 = vmul.f32 %v4267_v23, %v904_v33  ;;  %v909_v42 = vmul.f32 %v4267_v23, %v903_v36  ;;  %v916_v36 = vld [vmem:[#allocation5 + $0x70] sm:$0xff] }
 0x11d   : > { %718 = vmatprep.mubr.f32.mxu0 %v3701_v0  ;;  %v4336_v13 = vsel %vm310_vm14, 1.0, %v3701_v0 }
 0x11e   : > { %v1030_v38 = vpop.permute.xlu1 %1029  ;;  %v1028_v39 = vpop.permute.xlu0 %1027  ;;  %v3208_v43 = vpack.c.bf16 %v912_v34, %v910_v37  ;;  %v3210_v51 = vpack.c.bf16 %v911_v41, %v909_v42 }
 0x120   : > { %3104 = vmatmul.mubr.msk.f32.gmra.mrb[6].mxu0 %vm383_vm6, %v623_v32 }
 0x121   : > { %847 = vmatprep.mubr.f32.mxu0 %v3701_v0 }
 0x122   : > { %v1038_v45 = vpop.permute.xlu1 %1037  ;;  %v1036_v46 = vpop.permute.xlu0 %1035 }
 0x123   : > { %v1049_v47 = vsel %vm1043_vm12, %v1038_v45, %v1030_v38  ;;  %v1048_v48 = vsel %vm1043_vm12, %v1036_v46, %v1028_v39  ;;  %v1045_v58 = vsel %vm1043_vm12, %v1030_v38, %v1038_v45  ;;  %v1044_v59 = vsel %vm1043_vm12, %v1028_v39, %v1036_v46  ;;  %v917_v45 = vld [vmem:[#allocation5 + $0x78] sm:$0xff] }
 0x124   : > { %3105 = vmatmul.mubr.msk.f32.vlgmr.msra.gmra.mrb[0].mxu0 %vm383_vm6, %v767_v12  ;;  %v1055_v49 = vmul.f32 %v4200_v27, %v1049_v47  ;;  %v1053_v50 = vmul.f32 %v4200_v27, %v1048_v48  ;;  %v1054_v35 = vmul.f32 %v4305_v57, %v1045_v58  ;;  %v1052_v2 = vmul.f32 %v4305_v57, %v1044_v59 }
 0x125   : > { %3207 = vmatpush1.bf16.msra.mxu0 %v3206_v40  ;;  %853 = vmatprep.mubr.f32.mxu0 %v3701_v0 }
 0x126   : > { %3209 = vmatprep.subr.bf16.mxu0 %v3208_v43  ;;  %v1034_v53 = vpop.permute.xlu1 %1033  ;;  %v1032_v54 = vpop.permute.xlu0 %1031  ;;  %v3212_v55 = vpack.c.bf16 %v1055_v49, %v1053_v50  ;;  %v3214_v16 = vpack.c.bf16 %v1054_v35, %v1052_v2 }
 0x128   : > { %3106 = vmatmul.mubr.msk.f32.gmra.mrb[2].mxu0 %vm383_vm6, %v768_v52 }
 0x129   : > { %3211 = vmatpush1.bf16.msra.mxu0 %v3210_v51  ;;  %859 = vmatprep.mubr.f32.mxu0 %v3701_v0 }
 0x12a   : > { %3213 = vmatprep.subr.bf16.mxu0 %v3212_v55  ;;  %v1042_v60 = vpop.permute.xlu1 %1041  ;;  %v1040_v61 = vpop.permute.xlu0 %1039  ;;  %v1061_v55 = vld [vmem:[#allocation5 + $0xa0] sm:$0xff] }
 0x12b   : > { %v1051_v63 = vsel %vm1043_vm12, %v1042_v60, %v1034_v53  ;;  %v1050_v1 = vsel %vm1043_vm12, %v1040_v61, %v1032_v54  ;;  %v1047_v4 = vsel %vm1043_vm12, %v1034_v53, %v1042_v60  ;;  %v1046_v6 = vsel %vm1043_vm12, %v1032_v54, %v1040_v61 }
 0x12c   : > { %3107 = vmatmul.mubr.msk.f32.gmra.mrb[4].mxu0 %vm383_vm6, %v769_v56  ;;  %v1059_v5 = vmul.f32 %v4200_v27, %v1051_v63  ;;  %v1057_v7 = vmul.f32 %v4200_v27, %v1050_v1  ;;  %v1058_v19 = vmul.f32 %v4305_v57, %v1047_v4  ;;  %v1056_v20 = vmul.f32 %v4305_v57, %v1046_v6 }
 0x12d   : > { %865 = vmatprep.mubr.f32.mxu0 %v3701_v0  ;;  %v4374_v56 = vsel %vm284_vm13, 1.0, %v3701_v0 }
 0x12e   : > { %v1177_v8 = vpop.permute.xlu1 %1176  ;;  %v1175_v9 = vpop.permute.xlu0 %1174  ;;  %v3216_v24 = vpack.c.bf16 %v1059_v5, %v1057_v7  ;;  %v3218_v14 = vpack.c.bf16 %v1058_v19, %v1056_v20  ;;  %v1063_v7 = vld [vmem:[#allocation5 + $0xb0] sm:$0xff]  ;;  %v1064_v20 = vld [vmem:[#allocation5 + $0xb8] sm:$0xff] }
 0x130   : > { %3108 = vmatmul.mubr.msk.f32.gmra.mrb[6].mxu0 %vm383_vm6, %v770_v3  ;;  %v1062_v3 = vld [vmem:[#allocation5 + $0xa8] sm:$0xff] }
 0x131   : > { %994 = vmatprep.mubr.f32.mxu0 %v3701_v0 }
 0x132   : > { %v1185_v25 = vpop.permute.xlu1 %1184  ;;  %v1183_v26 = vpop.permute.xlu0 %1182 }
 0x133   : > { %v1196_v15 = vsel %vm1190_vm15, %v1185_v25, %v1177_v8  ;;  %v1195_v28 = vsel %vm1190_vm15, %v1183_v26, %v1175_v9  ;;  %v1192_v37 = vsel %vm1190_vm15, %v1177_v8, %v1185_v25  ;;  %v1191_v38 = vsel %vm1190_vm15, %v1175_v9, %v1183_v26 }
 0x134   : > { %3109 = vmatmul.mubr.msk.f32.vlgmr.msra.gmra.mrb[0].mxu0 %vm383_vm6, %v914_v22  ;;  %v1202_v29 = vmul.f32 %v4336_v13, %v1196_v15  ;;  %v1200_v30 = vmul.f32 %v4336_v13, %v1195_v28  ;;  %v1201_v12 = vmul.f32 %v4267_v23, %v1192_v37  ;;  %v1199_v43 = vmul.f32 %v4267_v23, %v1191_v38 }
 0x135   : > { %3215 = vmatpush1.bf16.msra.mxu0 %v3214_v16  ;;  %1000 = vmatprep.mubr.f32.mxu0 %v3701_v0 }
 0x136   : > { %3217 = vmatprep.subr.bf16.mxu0 %v3216_v24  ;;  %v1181_v32 = vpop.permute.xlu1 %1180  ;;  %v1179_v33 = vpop.permute.xlu0 %1178  ;;  %v3220_v34 = vpack.c.bf16 %v1202_v29, %v1200_v30  ;;  %v3222_v52 = vpack.c.bf16 %v1201_v12, %v1199_v43  ;;  %v1208_v29 = vld [vmem:[#allocation5 + $0xc0] sm:$0xff]  ;;  %v4406_v30 = vsel %vm320_vm1, 1.0, %v3701_v0  ;;  %v1210_v43 = vld [vmem:[#allocation5 + $0xd0] sm:$0xff] }
 0x138   : > { %3110 = vmatmul.mubr.msk.f32.gmra.mrb[2].mxu0 %vm383_vm6, %v915_v31 }
 0x139   : > { %3219 = vmatpush1.bf16.msra.mxu0 %v3218_v14  ;;  %1006 = vmatprep.mubr.f32.mxu0 %v3701_v0 }
 0x13a   : > { %3221 = vmatprep.subr.bf16.mxu0 %v3220_v34  ;;  %v1189_v39 = vpop.permute.xlu1 %1188  ;;  %v1187_v40 = vpop.permute.xlu0 %1186 }
 0x13b   : > { %v1198_v41 = vsel %vm1190_vm15, %v1189_v39, %v1181_v32  ;;  %v1197_v42 = vsel %vm1190_vm15, %v1187_v40, %v1179_v33  ;;  %v1194_v46 = vsel %vm1190_vm15, %v1181_v32, %v1189_v39  ;;  %v1193_v48 = vsel %vm1190_vm15, %v1179_v33, %v1187_v40  ;;  %v1209_v40 = vld [vmem:[#allocation5 + $0xc8] sm:$0xff] }
 0x13c   : > { %3111 = vmatmul.mubr.msk.f32.gmra.mrb[4].mxu0 %vm383_vm6, %v916_v36  ;;  %v1206_v47 = vmul.f32 %v4336_v13, %v1198_v41  ;;  %v1204_v49 = vmul.f32 %v4336_v13, %v1197_v42  ;;  %v1205_v53 = vmul.f32 %v4267_v23, %v1194_v46  ;;  %v1203_v54 = vmul.f32 %v4267_v23, %v1193_v48 }
 0x13d   : > { %1012 = vmatprep.mubr.f32.mxu0 %v3701_v0 }
 0x13e   : > { %v1324_v50 = vpop.permute.xlu1 %1323  ;;  %v1322_v51 = vpop.permute.xlu0 %1321  ;;  %v3224_v58 = vpack.c.bf16 %v1206_v47, %v1204_v49  ;;  %v3226_v2 = vpack.c.bf16 %v1205_v53, %v1203_v54  ;;  %v1211_v53 = vld [vmem:[#allocation5 + $0xd8] sm:$0xff] }
 0x140   : > { %3112 = vmatmul.mubr.msk.f32.gmra.mrb[6].mxu0 %vm383_vm6, %v917_v45 }
 0x141   : > { %1141 = vmatprep.mubr.f32.mxu0 %v3701_v0 }
 0x142   : > { %v1332_v59 = vpop.permute.xlu1 %1331  ;;  %v1330_v60 = vpop.permute.xlu0 %1329 }
 0x143   : > { %v1343_v61 = vsel %vm1337_vm0, %v1332_v59, %v1324_v50  ;;  %v1342_v63 = vsel %vm1337_vm0, %v1330_v60, %v1322_v51  ;;  %v1339_v15 = vsel %vm1337_vm0, %v1324_v50, %v1332_v59  ;;  %v1338_v28 = vsel %vm1337_vm0, %v1322_v51, %v1330_v60 }
 0x144   : > { %3113 = vmatmul.mubr.msk.f32.vlgmr.msra.gmra.mrb[0].mxu0 %vm383_vm6, %v1061_v55  ;;  %v1349_v1 = vmul.f32 %v4374_v56, %v1343_v61  ;;  %v1347_v35 = vmul.f32 %v4374_v56, %v1342_v63  ;;  %v3230_v33 = vpack.c.bf16 %v1339_v15, %v1338_v28 }
 0x145   : > { %3223 = vmatpush1.bf16.msra.mxu0 %v3222_v52  ;;  %1147 = vmatprep.mubr.f32.mxu0 %v3701_v0 }
 0x146   : > { %3225 = vmatprep.subr.bf16.mxu0 %v3224_v58  ;;  %v1328_v4 = vpop.permute.xlu1 %1327  ;;  %v1326_v5 = vpop.permute.xlu0 %1325  ;;  %v3228_v6 = vpack.c.bf16 %v1349_v1, %v1347_v35  ;;  %v1355_v1 = vld [vmem:[#allocation5 + $0xe0] sm:$0xff] }
 0x148   : > { %3114 = vmatmul.mubr.msk.f32.gmra.mrb[2].mxu0 %vm383_vm6, %v1062_v3  ;;  %v1356_v3 = vld [vmem:[#allocation5 + $0xe8] sm:$0xff] }
 0x149   : > { %3227 = vmatpush1.bf16.msra.mxu0 %v3226_v2  ;;  %1153 = vmatprep.mubr.f32.mxu0 %v3701_v0 }
 0x14a   : > { %3229 = vmatprep.subr.bf16.mxu0 %v3228_v6  ;;  %v1336_v8 = vpop.permute.xlu1 %1335  ;;  %v1334_v9 = vpop.permute.xlu0 %1333  ;;  %v1502_v6 = vld [vmem:[#allocation5 + $0x100] sm:$0xff] }
 0x14b   : > { %v1345_v16 = vsel %vm1337_vm0, %v1336_v8, %v1328_v4  ;;  %v1344_v19 = vsel %vm1337_vm0, %v1334_v9, %v1326_v5  ;;  %v1341_v11 = vsel %vm1337_vm0, %v1328_v4, %v1336_v8  ;;  %v1340_v17 = vsel %vm1337_vm0, %v1326_v5, %v1334_v9  ;;  %v1357_v4 = vld [vmem:[#allocation5 + $0xf0] sm:$0xff]  ;;  %v1358_v5 = vld [vmem:[#allocation5 + $0xf8] sm:$0xff] }
 0x14c   : > { %3115 = vmatmul.mubr.msk.f32.gmra.mrb[4].mxu0 %vm383_vm6, %v1063_v7  ;;  %v1353_v22 = vmul.f32 %v4374_v56, %v1345_v16  ;;  %v1351_v24 = vmul.f32 %v4374_v56, %v1344_v19  ;;  %v3234_v39 = vpack.c.bf16 %v1341_v11, %v1340_v17  ;;  %v1503_v7 = vld [vmem:[#allocation5 + $0x108] sm:$0xff]  ;;  %v1504_v8 = vld [vmem:[#allocation5 + $0x110] sm:$0xff]  ;;  %v1505_v9 = vld [vmem:[#allocation5 + $0x118] sm:$0xff] }
 0x14d   : > { %1159 = vmatprep.mubr.f32.mxu0 %v3701_v0 }
 0x14e   : > { %v1471_v25 = vpop.permute.xlu1 %1470  ;;  %v1469_v26 = vpop.permute.xlu0 %1468  ;;  %v3232_v14 = vpack.c.bf16 %v1353_v22, %v1351_v24 }
 0x150   : > { %3116 = vmatmul.mubr.msk.f32.gmra.mrb[6].mxu0 %vm383_vm6, %v1064_v20 }
 0x151   : > { %1288 = vmatprep.mubr.f32.mxu0 %v3701_v0 }
 0x152   : > { %v1479_v31 = vpop.permute.xlu1 %1478  ;;  %v1477_v32 = vpop.permute.xlu0 %1476 }
 0x153   : > { %v1490_v34 = vsel %vm1484_vm3, %v1479_v31, %v1471_v25  ;;  %v1489_v36 = vsel %vm1484_vm3, %v1477_v32, %v1469_v26  ;;  %v1486_v45 = vsel %vm1484_vm3, %v1471_v25, %v1479_v31  ;;  %v1485_v46 = vsel %vm1484_vm3, %v1469_v26, %v1477_v32 }
 0x154   : > { %3117 = vmatmul.mubr.msk.f32.vlgmr.msra.gmra.mrb[0].mxu0 %vm383_vm6, %v1208_v29  ;;  %v1496_v37 = vmul.f32 %v4406_v30, %v1490_v34  ;;  %v1494_v38 = vmul.f32 %v4406_v30, %v1489_v36  ;;  %v1495_v51 = vmul.f32 %v4305_v57, %v1486_v45  ;;  %v1493_v52 = vmul.f32 %v4305_v57, %v1485_v46 }
 0x155   : > { %3231 = vmatpush1.bf16.msra.mxu0 %v3230_v33  ;;  %1294 = vmatprep.mubr.f32.mxu0 %v3701_v0 }
 0x156   : > { %3233 = vmatprep.subr.bf16.mxu0 %v3232_v14  ;;  %v1475_v41 = vpop.permute.xlu1 %1474  ;;  %v1473_v42 = vpop.permute.xlu0 %1472  ;;  %v3236_v12 = vpack.c.bf16 %v1496_v37, %v1494_v38  ;;  %v3238_v60 = vpack.c.bf16 %v1495_v51, %v1493_v52 }
 0x158   : > { %3118 = vmatmul.mubr.msk.f32.gmra.mrb[2].mxu0 %vm383_vm6, %v1209_v40 }
 0x159   : > { %3235 = vmatpush1.bf16.msra.mxu0 %v3234_v39  ;;  %1300 = vmatprep.mubr.f32.mxu0 %v3701_v0 }
 0x15a   : > { %3237 = vmatprep.subr.bf16.mxu0 %v3236_v12  ;;  %v1483_v47 = vpop.permute.xlu1 %1482 }
 0x15b   : > { %v1492_v48 = vsel %vm1484_vm3, %v1483_v47, %v1475_v41  ;;  %v1481_v49 = vpop.permute.xlu0 %1480  ;;  %v1488_v54 = vsel %vm1484_vm3, %v1475_v41, %v1483_v47 }
 0x15c   : > { %3119 = vmatmul.mubr.msk.f32.gmra.mrb[4].mxu0 %vm383_vm6, %v1210_v43  ;;  %v1491_v50 = vsel %vm1484_vm3, %v1481_v49, %v1473_v42  ;;  %v1500_v55 = vmul.f32 %v4406_v30, %v1492_v48  ;;  %v1487_v58 = vsel %vm1484_vm3, %v1473_v42, %v1481_v49  ;;  %v1499_v61 = vmul.f32 %v4305_v57, %v1488_v54 }
 0x15d   : > { %1306 = vmatprep.mubr.f32.mxu0 %v3701_v0  ;;  %v1498_v59 = vmul.f32 %v4406_v30, %v1491_v50  ;;  %v1497_v63 = vmul.f32 %v4305_v57, %v1487_v58 }
 0x15f   : > { %v3240_v35 = vpack.c.bf16 %v1500_v55, %v1498_v59  ;;  %v3242_v2 = vpack.c.bf16 %v1499_v61, %v1497_v63  ;;  %v329_v63 = vld [vmem:[%s4954_s4] sm:$0xff] }
 0x160   : > { %3120 = vmatmul.mubr.msk.f32.gmra.mrb[6].mxu0 %vm383_vm6, %v1211_v53 }
 0x161   : > { %1435 = vmatprep.mubr.f32.mxu0 %v3701_v0 }
 0x164   : > { %3121 = vmatmul.mubr.msk.f32.vlgmr.msra.gmra.mrb[0].mxu0 %vm383_vm6, %v1355_v1 }
 0x165   : > { %3239 = vmatpush1.bf16.msra.mxu0 %v3238_v60  ;;  %1441 = vmatprep.mubr.f32.mxu0 %v3701_v0 }
 0x166   : > { %3241 = vmatprep.subr.bf16.mxu0 %v3240_v35 }
 0x168   : > { %3122 = vmatmul.mubr.msk.f32.gmra.mrb[2].mxu0 %vm383_vm6, %v1356_v3 }
 0x169   : > { %3243 = vmatpush1.bf16.msra.mxu0 %v3242_v2  ;;  %1447 = vmatprep.mubr.f32.mxu0 %v3701_v0 }
 0x16b   : > { %v1623_v24 = vpop.permute.xlu1 %1622 }
 0x16c   : > { %3123 = vmatmul.mubr.msk.f32.gmra.mrb[4].mxu0 %vm383_vm6, %v1357_v4  ;;  %v1618_v16 = vpop.permute.xlu0 %1617 }
 0x16d   : > { %1453 = vmatprep.mubr.f32.mxu0 %v3701_v0 }
 0x16f   : > { %v1628_v31 = vpop.permute.xlu1 %1627 }
 0x170   : > { %3124 = vmatmul.mubr.msk.f32.gmra.mrb[6].mxu0 %vm383_vm6, %v1358_v5  ;;  %v1633_v39 = vpop.permute.xlu0 %1632 }
 0x171   : > { %1582 = vmatprep.mubr.f32.mxu0 %v3701_v0 }
 0x174   : > { %3125 = vmatmul.mubr.msk.f32.vlgmr.msra.gmra.mrb[0].mxu0 %vm383_vm6, %v1502_v6  ;;  %v331_v6 = vld [vmem:[%s4954_s4 + $0x10] sm:$0xff] }
 0x175   : > { %1588 = vmatprep.mubr.f32.mxu0 %v3701_v0 }
 0x178   : > { %3126 = vmatmul.mubr.msk.f32.gmra.mrb[2].mxu0 %vm383_vm6, %v1503_v7  ;;  %v330_v7 = vld [vmem:[%s4954_s4 + $0x8] sm:$0xff] }
 0x179   : > { %1594 = vmatprep.mubr.f32.mxu0 %v3701_v0 }
 0x17c   : > { %3127 = vmatmul.mubr.msk.f32.gmra.mrb[4].mxu0 %vm383_vm6, %v1504_v8 }
 0x17d   : > { %1600 = vmatprep.mubr.f32.mxu0 %v3701_v0 }
 0x180   : > { %3128 = vmatmul.mubr.msk.f32.gmra.mrb[6].mxu0 %vm383_vm6, %v1505_v9 }
 0x247   : > { %v1584_v19 = vpop.f32.mrb[0].mxu0 }
 0x248   : > { %v1635_v20 = vadd.f32 %v1618_v16, %v1584_v19  ;;  %v1586_v22 = vpop.f32.mrb[1].mxu0 }
 0x249   : > { %v1636_v26 = vadd.f32 %v1618_v16, %v1586_v22 }
 0x24a   : > { %v4459_v25 = vmax.f32 %v1635_v20, 0.0 }
 0x24b   : > { %v1590_v15 = vpop.f32.mrb[2].mxu0  ;;  %v4463_v11 = vmax.f32 %v1636_v26, 0.0 }
 0x24c   : > { %v1637_v28 = vadd.f32 %v1623_v24, %v1590_v15  ;;  %v1592_v29 = vpop.f32.mrb[3].mxu0  ;;  %1656 = vrot.lane.b32.xlu1 %v4459_v25, %s3702_s24  ;;  %v332_v15 = vld [vmem:[%s4954_s4 + $0x18] sm:$0xff] }
 0x24d   : > { %v1638_v14 = vadd.f32 %v1623_v24, %v1592_v29 }
 0x24e   : > { %v4465_v17 = vmax.f32 %v1637_v28, 0.0 }
 0x24f   : > { %v1596_v32 = vpop.f32.mrb[4].mxu0  ;;  %v4471_v36 = vmax.f32 %v1638_v14, 0.0 }
 0x250   : > { %v1639_v33 = vadd.f32 %v1628_v31, %v1596_v32  ;;  %v1598_v34 = vpop.f32.mrb[5].mxu0  ;;  %1658 = vrot.lane.b32.xlu0 %v4465_v17, %s3702_s24  ;;  %1664 = vrot.lane.b32.xlu1 %v4463_v11, %s3702_s24 }
 0x251   : > { %v1640_v38 = vadd.f32 %v1628_v31, %v1598_v34  ;;  %v3252_v32 = vpack.c.bf16 %v4471_v36, %v4463_v11 }
 0x252   : > { %v4473_v37 = vmax.f32 %v1639_v33, 0.0  ;;  %v1688_v33 = vld [vmem:[#allocation7] sm:$0xff] }
 0x253   : > { %v1602_v40 = vpop.f32.mrb[6].mxu0  ;;  %v4479_v12 = vmax.f32 %v1640_v38, 0.0  ;;  %v3254_v38 = vpack.c.bf16 %v4465_v17, %v4459_v25 }
 0x254   : > { %v1641_v41 = vadd.f32 %v1633_v39, %v1602_v40  ;;  %v1604_v42 = vpop.f32.mrb[7].mxu0  ;;  %1666 = vrot.lane.b32.xlu0 %v4471_v36, %s3702_s24  ;;  %1660 = vrot.lane.b32.xlu1 %v4473_v37, %s3702_s24 }
 0x255   : > { %v1642_v45 = vadd.f32 %v1633_v39, %v1604_v42 }
 0x256   : > { %v4481_v43 = vmax.f32 %v1641_v41, 0.0 }
 0x257   : > { %v4487_v46 = vmax.f32 %v1642_v45, 0.0 }
 0x258   : > { %1668 = vrot.lane.b32.xlu1 %v4479_v12, %s3702_s24  ;;  %1662 = vrot.lane.b32.xlu0 %v4481_v43, %s3702_s24 }
 0x259   : > { %v3256_v39 = vpack.c.bf16 %v4487_v46, %v4479_v12 }
 0x25c   : > { %1894 = vrot.lane.b32.xlu1 %v4459_v25, %s3703_s26  ;;  %1670 = vrot.lane.b32.xlu0 %v4487_v46, %s3702_s24  ;;  %s4903_s24 = scalar_lea.hbm %s4955_s5, %s3171_s16 }
 0x260   : > { %1902 = vrot.lane.b32.xlu1 %v4463_v11, %s3703_s26  ;;  %1896 = vrot.lane.b32.xlu0 %v4465_v17, %s3703_s26 }
 0x264   : > { %1898 = vrot.lane.b32.xlu1 %v4473_v37, %s3703_s26  ;;  %1904 = vrot.lane.b32.xlu0 %v4471_v36, %s3703_s26 }
 0x268   : > { %1906 = vrot.lane.b32.xlu1 %v4479_v12, %s3703_s26  ;;  %1900 = vrot.lane.b32.xlu0 %v4481_v43, %s3703_s26 }
 0x26c   : > { %2040 = vrot.lane.b32.xlu1 %v4459_v25, %s3704_s8  ;;  %1908 = vrot.lane.b32.xlu0 %v4487_v46, %s3703_s26 }
 0x270   : > { %2048 = vrot.lane.b32.xlu1 %v4463_v11, %s3704_s8  ;;  %2042 = vrot.lane.b32.xlu0 %v4465_v17, %s3704_s8 }
 0x274   : > { %2044 = vrot.lane.b32.xlu1 %v4473_v37, %s3704_s8  ;;  %2050 = vrot.lane.b32.xlu0 %v4471_v36, %s3704_s8 }
 0x278   : > { %2052 = vrot.lane.b32.xlu1 %v4479_v12, %s3704_s8  ;;  %2046 = vrot.lane.b32.xlu0 %v4481_v43, %s3704_s8 }
 0x27c   : > { %2186 = vrot.lane.b32.xlu1 %v4459_v25, %s3705_s10  ;;  %2054 = vrot.lane.b32.xlu0 %v4487_v46, %s3704_s8  ;;  %s2961_s8 = scalar_lea.sflag [#allocation4], %s3915_s29 }
 0x280   : > { %2194 = vrot.lane.b32.xlu1 %v4463_v11, %s3705_s10  ;;  %2188 = vrot.lane.b32.xlu0 %v4465_v17, %s3705_s10 }
 0x284   : > { %2190 = vrot.lane.b32.xlu1 %v4473_v37, %s3705_s10  ;;  %2196 = vrot.lane.b32.xlu0 %v4471_v36, %s3705_s10 }
 0x288   : > { %2198 = vrot.lane.b32.xlu1 %v4479_v12, %s3705_s10  ;;  %2192 = vrot.lane.b32.xlu0 %v4481_v43, %s3705_s10 }
 0x28c   : > { %2332 = vrot.lane.b32.xlu1 %v4459_v25, %s3706_s11  ;;  %2200 = vrot.lane.b32.xlu0 %v4487_v46, %s3705_s10  ;;  %s3711_s10 = smov [#allocation8]  }
 0x290   : > { %2340 = vrot.lane.b32.xlu1 %v4463_v11, %s3706_s11  ;;  %2334 = vrot.lane.b32.xlu0 %v4465_v17, %s3706_s11 }
 0x294   : > { %2336 = vrot.lane.b32.xlu1 %v4473_v37, %s3706_s11  ;;  %2342 = vrot.lane.b32.xlu0 %v4471_v36, %s3706_s11 }
 0x298   : > { %2344 = vrot.lane.b32.xlu1 %v4479_v12, %s3706_s11  ;;  %2338 = vrot.lane.b32.xlu0 %v4481_v43, %s3706_s11 }
 0x29c   : > { %2478 = vrot.lane.b32.xlu1 %v4459_v25, %s3707_s28  ;;  %2346 = vrot.lane.b32.xlu0 %v4487_v46, %s3706_s11  ;;  %s3626_s11 = sshll.u32 %s3711_s10, 4  ;;  %s3627_s11 = int_to_ptr.vmem [resolvable:$false] %s3626_s11 }
 0x29d   : > { %p3629_p7 = scmp.lt.s32.totalorder %s4896_s17, %s3627_s11 }
 0x2a0   : > { %2486 = vrot.lane.b32.xlu1 %v4463_v11, %s3707_s28  ;;  %2480 = vrot.lane.b32.xlu0 %v4465_v17, %s3707_s28 }
 0x2a4   : > { %2482 = vrot.lane.b32.xlu1 %v4473_v37, %s3707_s28  ;;  %2488 = vrot.lane.b32.xlu0 %v4471_v36, %s3707_s28 }
 0x2a8   : > { %2490 = vrot.lane.b32.xlu1 %v4479_v12, %s3707_s28  ;;  %2484 = vrot.lane.b32.xlu0 %v4481_v43, %s3707_s28 }
 0x2ac   : > { %2624 = vrot.lane.b32.xlu1 %v4459_v25, %s3708_s30  ;;  %2492 = vrot.lane.b32.xlu0 %v4487_v46, %s3707_s28  ;;  %s3628_s28 = scalar_lea.vmem %s3627_s11, 2048 }
 0x2ad   : > { %p3630_p9 = scmp.lt.s32.totalorder %s3628_s28, %s3622_s22 }
 0x2af   : > { %p3631_p12 = por %p3630_p9, %p3629_p7 }
 0x2b0   : > { %2632 = vrot.lane.b32.xlu1 %v4463_v11, %s3708_s30  ;;  %2626 = vrot.lane.b32.xlu0 %v4465_v17, %s3708_s30 }
 0x2b1   : > { %p3632_p2 = pnand %p3631_p12, %p3625_p3 }
 0x2b4   : > { %2628 = vrot.lane.b32.xlu1 %v4473_v37, %s3708_s30  ;;  %2634 = vrot.lane.b32.xlu0 %v4471_v36, %s3708_s30 }
 0x2b8   : > { %2636 = vrot.lane.b32.xlu1 %v4479_v12, %s3708_s30  ;;  %2630 = vrot.lane.b32.xlu0 %v4481_v43, %s3708_s30 }
 0x2bc   : > { %2770 = vrot.lane.b32.xlu1 %v4459_v25, %s3709_s15  ;;  %2638 = vrot.lane.b32.xlu0 %v4487_v46, %s3708_s30  ;;  %v3258_v25 = vpack.c.bf16 %v4481_v43, %v4473_v37 }
 0x2be   : > { %v1657_v47 = vpop.permute.xlu1 %1656 }
 0x2c0   : > { %2778 = vrot.lane.b32.xlu1 %v4463_v11, %s3709_s15  ;;  %2772 = vrot.lane.b32.xlu0 %v4465_v17, %s3709_s15  ;;  %v1689_v11 = vld [vmem:[#allocation7 + $0x8] sm:$0xff] }
 0x2c2   : > { %v1665_v48 = vpop.permute.xlu1 %1664  ;;  %v1659_v49 = vpop.permute.xlu0 %1658 }
 0x2c3   : > { %v1676_v50 = vsel %vm362_vm2, %v1665_v48, %v1657_v47  ;;  %v1672_v51 = vsel %vm362_vm2, %v1657_v47, %v1665_v48  ;;  %v1691_v48 = vld [vmem:[#allocation7 + $0x18] sm:$0xff] }
 0x2c4   : > { %2774 = vrot.lane.b32.xlu1 %v4473_v37, %s3709_s15  ;;  %2780 = vrot.lane.b32.xlu0 %v4471_v36, %s3709_s15  ;;  %v1680_v54 = vmul.f32 %v4112_v21, %v1676_v50  ;;  %v1681_v60 = vmul.f32 %v4105_v18, %v1672_v51 }
 0x2c6   : > { %v1661_v52 = vpop.permute.xlu1 %1660  ;;  %v1667_v53 = vpop.permute.xlu0 %1666 }
 0x2c7   : > { %v1673_v55 = vsel %vm362_vm2, %v1659_v49, %v1667_v53  ;;  %v1677_v58 = vsel %vm362_vm2, %v1667_v53, %v1659_v49 }
 0x2c8   : > { %v1682_v59 = vmul.f32 %v4112_v21, %v1677_v58  ;;  %2782 = vrot.lane.b32.xlu1 %v4479_v12, %s3709_s15  ;;  %2776 = vrot.lane.b32.xlu0 %v4481_v43, %s3709_s15  ;;  %v1683_v61 = vmul.f32 %v4105_v18, %v1673_v55  ;;  %v1690_v12 = vld [vmem:[#allocation7 + $0x10] sm:$0xff]  ;;  %v1652_v55 = vld [vmem:[#allocation7 + $0x80] sm:$0xff] }
 0x2ca   : > { %v1669_v1 = vpop.permute.xlu1 %1668  ;;  %v1663_v35 = vpop.permute.xlu0 %1662  ;;  %v3244_v2 = vpack.c.bf16 %v1683_v61, %v1681_v60  ;;  %v3246_v3 = vpack.c.bf16 %v1682_v59, %v1680_v54 }
 0x2cb   : > { %v1678_v4 = vsel %vm362_vm2, %v1669_v1, %v1661_v52  ;;  %v1674_v5 = vsel %vm362_vm2, %v1661_v52, %v1669_v1 }
 0x2cc   : > { %2918 = vperm.xlu1 %3527, %v329_v63   ;;  %2784 = vrot.lane.b32.xlu0 %v4487_v46, %s3709_s15  ;;  %v1684_v16 = vmul.f32 %v4112_v21, %v1678_v4  ;;  %v1685_v22 = vmul.f32 %v4105_v18, %v1674_v5 }
 0x2cd   : > { %3245 = vmatprep.subr.bf16.mxu1 %v3244_v2 }
 0x2ce   : > { %3247 = vmatpush1.bf16.msra.mxu1 %v3246_v3  ;;  %v1895_v8 = vpop.permute.xlu1 %1894  ;;  %v1671_v9 = vpop.permute.xlu0 %1670 }
 0x2cf   : > { %v1675_v19 = vsel %vm362_vm2, %v1663_v35, %v1671_v9  ;;  %v1679_v20 = vsel %vm362_vm2, %v1671_v9, %v1663_v35 }
 0x2d0   : > { %v1686_v24 = vmul.f32 %v4112_v21, %v1679_v20  ;;  %v1687_v26 = vmul.f32 %v4105_v18, %v1675_v19  ;;  %2928 = vperm.xlu1 %3527, %v331_v6   ;;  %2923 = vperm.xlu0 %3526, %v330_v7   ;;  %v1653_v6 = vld [vmem:[#allocation7 + $0x88] sm:$0xff]  ;;  %v1654_v19 = vld [vmem:[#allocation7 + $0x90] sm:$0xff] }
 0x2d2   : > { %v1903_v28 = vpop.permute.xlu1 %1902  ;;  %v1897_v29 = vpop.permute.xlu0 %1896  ;;  %v3248_v14 = vpack.c.bf16 %v1687_v26, %v1685_v22  ;;  %v3250_v31 = vpack.c.bf16 %v1686_v24, %v1684_v16  ;;  %v1655_v26 = vld [vmem:[#allocation7 + $0x98] sm:$0xff] }
 0x2d3   : > { %v1910_v42 = vsel %vm602_vm5, %v1895_v8, %v1903_v28  ;;  %v1914_v37 = vsel %vm602_vm5, %v1903_v28, %v1895_v8 }
 0x2d4   : > { %2933 = vperm.xlu0 %3526, %v332_v15   ;;  %3249 = vmatprep.subr.bf16.mxu1 %v3248_v14  ;;  %v1918_v52 = vmul.f32 %v4162_v62, %v1914_v37 }
 0x2d5   : > { %3251 = vmatpush1.bf16.msra.mxu1 %v3250_v31 }
 0x2d6   : > { %v1899_v21 = vpop.permute.xlu1 %1898  ;;  %3253 = vmatprep.subr.bf16.mxu1 %v3252_v32  ;;  %v1905_v34 = vpop.permute.xlu0 %1904 }
 0x2d7   : > { %v1911_v40 = vsel %vm602_vm5, %v1897_v29, %v1905_v34  ;;  %v1915_v47 = vsel %vm602_vm5, %v1905_v34, %v1897_v29 }
 0x2d8   : > { %3129 = vmatmul.mubr.msk.f32.vlgmr.msra.gmra.mrb[0].mxu1 %vm383_vm6, %v1688_v33  ;;  %v3260_v17 = vpack.c.bf16 %v1911_v40, %v1910_v42  ;;  %v1920_v50 = vmul.f32 %v4162_v62, %v1915_v47  ;;  %v1928_v47 = vld [vmem:[#allocation7 + $0x28] sm:$0xff] }
 0x2d9   : > { %3255 = vmatpush1.bf16.msra.mxu1 %v3254_v38  ;;  %1774 = vmatprep.mubr.f32.mxu1 %v3701_v0  ;;  %v1927_v38 = vld [vmem:[#allocation7 + $0x20] sm:$0xff] }
 0x2da   : > { %v1907_v36 = vpop.permute.xlu1 %1906  ;;  %3257 = vmatprep.subr.bf16.mxu1 %v3256_v39  ;;  %v1901_v41 = vpop.permute.xlu0 %1900  ;;  %v3262_v61 = vpack.c.bf16 %v1920_v50, %v1918_v52  ;;  %v1929_v50 = vld [vmem:[#allocation7 + $0x30] sm:$0xff] }
 0x2db   : > { %v1916_v58 = vsel %vm602_vm5, %v1907_v36, %v1899_v21  ;;  %v1912_v63 = vsel %vm602_vm5, %v1899_v21, %v1907_v36 }
 0x2dc   : > { %3130 = vmatmul.mubr.msk.f32.gmra.mrb[2].mxu1 %vm383_vm6, %v1689_v11  ;;  %v1922_v5 = vmul.f32 %v4162_v62, %v1916_v58 }
 0x2dd   : > { %3259 = vmatpush1.bf16.msra.mxu1 %v3258_v25  ;;  %1780 = vmatprep.mubr.f32.mxu1 %v3701_v0 }
 0x2de   : > { %v2041_v45 = vpop.permute.xlu1 %2040  ;;  %3261 = vmatprep.subr.bf16.mxu1 %v3260_v17  ;;  %v1909_v46 = vpop.permute.xlu0 %1908 }
 0x2df   : > { %v1917_v51 = vsel %vm602_vm5, %v1909_v46, %v1901_v41  ;;  %v1913_v53 = vsel %vm602_vm5, %v1901_v41, %v1909_v46 }
 0x2e0   : > { %3131 = vmatmul.mubr.msk.f32.gmra.mrb[4].mxu1 %vm383_vm6, %v1690_v12  ;;  %v1924_v1 = vmul.f32 %v4162_v62, %v1917_v51  ;;  %v3264_v2 = vpack.c.bf16 %v1913_v53, %v1912_v63 }
 0x2e1   : > { %1786 = vmatprep.mubr.f32.mxu1 %v3701_v0 }
 0x2e2   : > { %v2049_v43 = vpop.permute.xlu1 %2048  ;;  %v2043_v49 = vpop.permute.xlu0 %2042  ;;  %v3266_v16 = vpack.c.bf16 %v1924_v1, %v1922_v5 }
 0x2e3   : > { %v2056_v54 = vsel %vm749_vm8, %v2041_v45, %v2049_v43  ;;  %v2060_v15 = vsel %vm749_vm8, %v2049_v43, %v2041_v45 }
 0x2e4   : > { %3132 = vmatmul.mubr.msk.f32.gmra.mrb[6].mxu1 %vm383_vm6, %v1691_v48  ;;  %v2065_v3 = vmul.f32 %v4200_v27, %v2056_v54  ;;  %v2064_v21 = vmul.f32 %v4229_v44, %v2060_v15  ;;  %v1930_v54 = vld [vmem:[#allocation7 + $0x38] sm:$0xff] }
 0x2e5   : > { %1869 = vmatprep.mubr.f32.mxu1 %v3701_v0 }
 0x2e6   : > { %v2045_v59 = vpop.permute.xlu1 %2044  ;;  %v2051_v60 = vpop.permute.xlu0 %2050 }
 0x2e7   : > { %v2057_v35 = vsel %vm749_vm8, %v2043_v49, %v2051_v60  ;;  %v2061_v62 = vsel %vm749_vm8, %v2051_v60, %v2043_v49 }
 0x2e8   : > { %v2067_v4 = vmul.f32 %v4200_v27, %v2057_v35  ;;  %3133 = vmatmul.mubr.msk.f32.vlgmr.msra.gmra.mrb[0].mxu1 %vm383_vm6, %v1652_v55  ;;  %v2066_v14 = vmul.f32 %v4229_v44, %v2061_v62 }
 0x2e9   : > { %3263 = vmatpush1.bf16.msra.mxu1 %v3262_v61  ;;  %1875 = vmatprep.mubr.f32.mxu1 %v3701_v0 }
 0x2ea   : > { %3265 = vmatprep.subr.bf16.mxu1 %v3264_v2  ;;  %v2053_v7 = vpop.permute.xlu1 %2052  ;;  %v2047_v8 = vpop.permute.xlu0 %2046  ;;  %v3268_v9 = vpack.c.bf16 %v2067_v4, %v2065_v3  ;;  %v3270_v41 = vpack.c.bf16 %v2066_v14, %v2064_v21  ;;  %v2073_v3 = vld [vmem:[#allocation7 + $0x40] sm:$0xff]  ;;  %v2076_v21 = vld [vmem:[#allocation7 + $0x58] sm:$0xff] }
 0x2eb   : > { %v2058_v31 = vsel %vm749_vm8, %v2045_v59, %v2053_v7  ;;  %v2062_v39 = vsel %vm749_vm8, %v2053_v7, %v2045_v59 }
 0x2ec   : > { %3134 = vmatmul.mubr.msk.f32.gmra.mrb[2].mxu1 %vm383_vm6, %v1653_v6  ;;  %v2069_v40 = vmul.f32 %v4200_v27, %v2058_v31  ;;  %v2068_v46 = vmul.f32 %v4229_v44, %v2062_v39 }
 0x2ed   : > { %3267 = vmatpush1.bf16.msra.mxu1 %v3266_v16  ;;  %1881 = vmatprep.mubr.f32.mxu1 %v3701_v0 }
 0x2ee   : > { %3269 = vmatprep.subr.bf16.mxu1 %v3268_v9  ;;  %v2187_v20 = vpop.permute.xlu1 %2186  ;;  %v2055_v22 = vpop.permute.xlu0 %2054 }
 0x2ef   : > { %v2059_v24 = vsel %vm749_vm8, %v2047_v8, %v2055_v22  ;;  %v2063_v32 = vsel %vm749_vm8, %v2055_v22, %v2047_v8 }
 0x2f0   : > { %3135 = vmatmul.mubr.msk.f32.gmra.mrb[4].mxu1 %vm383_vm6, %v1654_v19  ;;  %v2071_v33 = vmul.f32 %v4200_v27, %v2059_v24  ;;  %v2070_v42 = vmul.f32 %v4229_v44, %v2063_v32 }
 0x2f1   : > { %1887 = vmatprep.mubr.f32.mxu1 %v3701_v0 }
 0x2f2   : > { %v2195_v28 = vpop.permute.xlu1 %2194  ;;  %v2189_v29 = vpop.permute.xlu0 %2188  ;;  %v3272_v45 = vpack.c.bf16 %v2071_v33, %v2069_v40  ;;  %v3274_v49 = vpack.c.bf16 %v2070_v42, %v2068_v46 }
 0x2f3   : > { %v2202_v34 = vsel %vm896_vm11, %v2187_v20, %v2195_v28  ;;  %v2206_v55 = vsel %vm896_vm11, %v2195_v28, %v2187_v20 }
 0x2f4   : > { %3136 = vmatmul.mubr.msk.f32.gmra.mrb[6].mxu1 %vm383_vm6, %v1655_v26  ;;  %v2211_v17 = vmul.f32 %v4105_v18, %v2202_v34  ;;  %v2210_v35 = vmul.f32 %v4267_v23, %v2206_v55 }
 0x2f5   : > { %2007 = vmatprep.mubr.f32.mxu1 %v3701_v0 }
 0x2f6   : > { %v2191_v11 = vpop.permute.xlu1 %2190  ;;  %v2197_v36 = vpop.permute.xlu0 %2196 }
 0x2f7   : > { %v2203_v25 = vsel %vm896_vm11, %v2189_v29, %v2197_v36  ;;  %v2207_v44 = vsel %vm896_vm11, %v2197_v36, %v2189_v29  ;;  %v2075_v29 = vld [vmem:[#allocation7 + $0x50] sm:$0xff] }
 0x2f8   : > { %v2213_v12 = vmul.f32 %v4105_v18, %v2203_v25  ;;  %3137 = vmatmul.mubr.msk.f32.vlgmr.msra.gmra.mrb[0].mxu1 %vm383_vm6, %v1927_v38  ;;  %v2212_v60 = vmul.f32 %v4267_v23, %v2207_v44 }
 0x2f9   : > { %3271 = vmatpush1.bf16.msra.mxu1 %v3270_v41  ;;  %2013 = vmatprep.mubr.f32.mxu1 %v3701_v0 }
 0x2fa   : > { %3273 = vmatprep.subr.bf16.mxu1 %v3272_v45  ;;  %v2199_v48 = vpop.permute.xlu1 %2198  ;;  %v2193_v37 = vpop.permute.xlu0 %2192  ;;  %v3276_v43 = vpack.c.bf16 %v2213_v12, %v2211_v17  ;;  %v3278_v8 = vpack.c.bf16 %v2212_v60, %v2210_v35  ;;  %v2219_v17 = vld [vmem:[#allocation7 + $0x60] sm:$0xff] }
 0x2fb   : > { %v2204_v61 = vsel %vm896_vm11, %v2191_v11, %v2199_v48  ;;  %v2208_v4 = vsel %vm896_vm11, %v2199_v48, %v2191_v11 }
 0x2fc   : > { %3138 = vmatmul.mubr.msk.f32.gmra.mrb[2].mxu1 %vm383_vm6, %v1928_v47  ;;  %v2215_v5 = vmul.f32 %v4105_v18, %v2204_v61  ;;  %v2214_v62 = vmul.f32 %v4267_v23, %v2208_v4 }
 0x2fd   : > { %3275 = vmatpush1.bf16.msra.mxu1 %v3274_v49  ;;  %2019 = vmatprep.mubr.f32.mxu1 %v3701_v0 }
 0x2fe   : > { %3277 = vmatprep.subr.bf16.mxu1 %v3276_v43  ;;  %v2333_v51 = vpop.permute.xlu1 %2332  ;;  %v2201_v52 = vpop.permute.xlu0 %2200 }
 0x2ff   : > { %v2205_v53 = vsel %vm896_vm11, %v2193_v37, %v2201_v52  ;;  %v2209_v63 = vsel %vm896_vm11, %v2201_v52, %v2193_v37 }
 0x300   : > { %3139 = vmatmul.mubr.msk.f32.gmra.mrb[4].mxu1 %vm383_vm6, %v1929_v50  ;;  %v2217_v1 = vmul.f32 %v4105_v18, %v2205_v53  ;;  %v2216_v9 = vmul.f32 %v4267_v23, %v2209_v63  ;;  %v2074_v18 = vld [vmem:[#allocation7 + $0x48] sm:$0xff] }
 0x301   : > { %2025 = vmatprep.mubr.f32.mxu1 %v3701_v0 }
 0x302   : > { %v2341_v58 = vpop.permute.xlu1 %2340  ;;  %v2335_v59 = vpop.permute.xlu0 %2334  ;;  %v3280_v22 = vpack.c.bf16 %v2217_v1, %v2215_v5  ;;  %v3282_v28 = vpack.c.bf16 %v2216_v9, %v2214_v62  ;;  %v2222_v1 = vld [vmem:[#allocation7 + $0x78] sm:$0xff] }
 0x303   : > { %v2352_v2 = vsel %vm1043_vm12, %v2341_v58, %v2333_v51  ;;  %v2348_v34 = vsel %vm1043_vm12, %v2333_v51, %v2341_v58  ;;  %v2221_v58 = vld [vmem:[#allocation7 + $0x70] sm:$0xff] }
 0x304   : > { %3140 = vmatmul.mubr.msk.f32.gmra.mrb[6].mxu1 %vm383_vm6, %v1930_v54  ;;  %v2357_v19 = vmul.f32 %v4200_v27, %v2352_v2  ;;  %v2356_v42 = vmul.f32 %v4305_v57, %v2348_v34  ;;  %v2367_v34 = vld [vmem:[#allocation7 + $0xb0] sm:$0xff] }
 0x305   : > { %2153 = vmatprep.mubr.f32.mxu1 %v3701_v0 }
 0x306   : > { %v2337_v6 = vpop.permute.xlu1 %2336  ;;  %v2343_v7 = vpop.permute.xlu0 %2342 }
 0x307   : > { %v2353_v16 = vsel %vm1043_vm12, %v2343_v7, %v2335_v59  ;;  %v2349_v32 = vsel %vm1043_vm12, %v2335_v59, %v2343_v7 }
 0x308   : > { %v2359_v20 = vmul.f32 %v4200_v27, %v2353_v16  ;;  %3141 = vmatmul.mubr.msk.f32.vlgmr.msra.gmra.mrb[0].mxu1 %vm383_vm6, %v2073_v3  ;;  %v2358_v40 = vmul.f32 %v4305_v57, %v2349_v32  ;;  %v2365_v16 = vld [vmem:[#allocation7 + $0xa0] sm:$0xff] }
 0x309   : > { %3279 = vmatpush1.bf16.msra.mxu1 %v3278_v8  ;;  %2159 = vmatprep.mubr.f32.mxu1 %v3701_v0 }
 0x30a   : > { %3281 = vmatprep.subr.bf16.mxu1 %v3280_v22  ;;  %v2345_v24 = vpop.permute.xlu1 %2344  ;;  %v2339_v26 = vpop.permute.xlu0 %2338  ;;  %v3284_v15 = vpack.c.bf16 %v2359_v20, %v2357_v19  ;;  %v3286_v48 = vpack.c.bf16 %v2358_v40, %v2356_v42  ;;  %v2368_v40 = vld [vmem:[#allocation7 + $0xb8] sm:$0xff] }
 0x30b   : > { %v2354_v11 = vsel %vm1043_vm12, %v2345_v24, %v2337_v6  ;;  %v2350_v12 = vsel %vm1043_vm12, %v2337_v6, %v2345_v24 }
 0x30c   : > { %3142 = vmatmul.mubr.msk.f32.gmra.mrb[2].mxu1 %vm383_vm6, %v2074_v18  ;;  %v2361_v45 = vmul.f32 %v4200_v27, %v2354_v11  ;;  %v2360_v52 = vmul.f32 %v4305_v57, %v2350_v12  ;;  %v2511_v12 = vld [vmem:[#allocation7 + $0xc0] sm:$0xff] }
 0x30d   : > { %3283 = vmatpush1.bf16.msra.mxu1 %v3282_v28  ;;  %2165 = vmatprep.mubr.f32.mxu1 %v3701_v0 }
 0x30e   : > { %3285 = vmatprep.subr.bf16.mxu1 %v3284_v15  ;;  %v2479_v14 = vpop.permute.xlu1 %2478  ;;  %v2347_v31 = vpop.permute.xlu0 %2346 }
 0x30f   : > { %v2355_v33 = vsel %vm1043_vm12, %v2347_v31, %v2339_v26  ;;  %v2351_v36 = vsel %vm1043_vm12, %v2339_v26, %v2347_v31 }
 0x310   : > { %3143 = vmatmul.mubr.msk.f32.gmra.mrb[4].mxu1 %vm383_vm6, %v2075_v29  ;;  %v2363_v41 = vmul.f32 %v4200_v27, %v2355_v33  ;;  %v2362_v37 = vmul.f32 %v4305_v57, %v2351_v36  ;;  %v2220_v27 = vld [vmem:[#allocation7 + $0x68] sm:$0xff] }
 0x311   : > { %2171 = vmatprep.mubr.f32.mxu1 %v3701_v0 }
 0x312   : > { %v2487_v38 = vpop.permute.xlu1 %2486  ;;  %v2481_v39 = vpop.permute.xlu0 %2480  ;;  %v3288_v51 = vpack.c.bf16 %v2363_v41, %v2361_v45  ;;  %v3290_v55 = vpack.c.bf16 %v2362_v37, %v2360_v52  ;;  %v2512_v52 = vld [vmem:[#allocation7 + $0xc8] sm:$0xff] }
 0x313   : > { %v2498_v25 = vsel %vm1190_vm15, %v2487_v38, %v2479_v14  ;;  %v2494_v35 = vsel %vm1190_vm15, %v2479_v14, %v2487_v38 }
 0x314   : > { %3144 = vmatmul.mubr.msk.f32.gmra.mrb[6].mxu1 %vm383_vm6, %v2076_v21  ;;  %v2503_v49 = vmul.f32 %v4336_v13, %v2498_v25  ;;  %v2502_v8 = vmul.f32 %v4267_v23, %v2494_v35 }
 0x315   : > { %2299 = vmatprep.mubr.f32.mxu1 %v3701_v0 }
 0x316   : > { %v2483_v46 = vpop.permute.xlu1 %2482  ;;  %v2489_v47 = vpop.permute.xlu0 %2488 }
 0x317   : > { %v2499_v43 = vsel %vm1190_vm15, %v2489_v47, %v2481_v39  ;;  %v2495_v61 = vsel %vm1190_vm15, %v2481_v39, %v2489_v47 }
 0x318   : > { %v2505_v50 = vmul.f32 %v4336_v13, %v2499_v43  ;;  %3145 = vmatmul.mubr.msk.f32.vlgmr.msra.gmra.mrb[0].mxu1 %vm383_vm6, %v2219_v17  ;;  %v2504_v4 = vmul.f32 %v4267_v23, %v2495_v61 }
 0x319   : > { %3287 = vmatpush1.bf16.msra.mxu1 %v3286_v48  ;;  %2305 = vmatprep.mubr.f32.mxu1 %v3701_v0 }
 0x31a   : > { %3289 = vmatprep.subr.bf16.mxu1 %v3288_v51  ;;  %v2491_v44 = vpop.permute.xlu1 %2490  ;;  %v2485_v53 = vpop.permute.xlu0 %2484  ;;  %v3292_v54 = vpack.c.bf16 %v2505_v50, %v2503_v49  ;;  %v3294_v18 = vpack.c.bf16 %v2504_v4, %v2502_v8 }
 0x31b   : > { %v2500_v5 = vsel %vm1190_vm15, %v2491_v44, %v2483_v46  ;;  %v2496_v19 = vsel %vm1190_vm15, %v2483_v46, %v2491_v44 }
 0x31c   : > { %3146 = vmatmul.mubr.msk.f32.gmra.mrb[2].mxu1 %vm383_vm6, %v2220_v27  ;;  %v2507_v20 = vmul.f32 %v4336_v13, %v2500_v5  ;;  %v2506_v14 = vmul.f32 %v4267_v23, %v2496_v19 }
 0x31d   : > { %3291 = vmatpush1.bf16.msra.mxu1 %v3290_v55  ;;  %2311 = vmatprep.mubr.f32.mxu1 %v3701_v0  ;;  %v2513_v55 = vld [vmem:[#allocation7 + $0xd0] sm:$0xff] }
 0x31e   : > { %3293 = vmatprep.subr.bf16.mxu1 %v3292_v54  ;;  %v2625_v59 = vpop.permute.xlu1 %2624  ;;  %v2493_v60 = vpop.permute.xlu0 %2492 }
 0x31f   : > { %v2501_v63 = vsel %vm1190_vm15, %v2493_v60, %v2485_v53  ;;  %v2497_v6 = vsel %vm1190_vm15, %v2485_v53, %v2493_v60 }
 0x320   : > { %3147 = vmatmul.mubr.msk.f32.gmra.mrb[4].mxu1 %vm383_vm6, %v2221_v58  ;;  %v2509_v7 = vmul.f32 %v4336_v13, %v2501_v63  ;;  %v2508_v24 = vmul.f32 %v4267_v23, %v2497_v6  ;;  %v2366_v13 = vld [vmem:[#allocation7 + $0xa8] sm:$0xff]  ;;  %v2514_v63 = vld [vmem:[#allocation7 + $0xd8] sm:$0xff]  ;;  %v2657_v6 = vld [vmem:[#allocation7 + $0xe0] sm:$0xff] }
 0x321   : > { %2317 = vmatprep.mubr.f32.mxu1 %v3701_v0 }
 0x322   : > { %v2633_v2 = vpop.permute.xlu1 %2632  ;;  %v2627_v3 = vpop.permute.xlu0 %2626  ;;  %v3296_v29 = vpack.c.bf16 %v2509_v7, %v2507_v20  ;;  %v3298_v21 = vpack.c.bf16 %v2508_v24, %v2506_v14  ;;  %v2805_v24 = vld [vmem:[#allocation7 + $0x110] sm:$0xff] }
 0x323   : > { %v2644_v9 = vsel %vm1337_vm0, %v2633_v2, %v2625_v59  ;;  %v2640_v45 = vsel %vm1337_vm0, %v2625_v59, %v2633_v2 }
 0x324   : > { %3148 = vmatmul.mubr.msk.f32.gmra.mrb[6].mxu1 %vm383_vm6, %v2222_v1  ;;  %v2649_v15 = vmul.f32 %v4374_v56, %v2644_v9 }
 0x325   : > { %2445 = vmatprep.mubr.f32.mxu1 %v3701_v0 }
 0x326   : > { %v2629_v22 = vpop.permute.xlu1 %2628  ;;  %v2635_v62 = vpop.permute.xlu0 %2634 }
 0x327   : > { %v2645_v26 = vsel %vm1337_vm0, %v2635_v62, %v2627_v3  ;;  %v2641_v42 = vsel %vm1337_vm0, %v2627_v3, %v2635_v62 }
 0x328   : > { %v2651_v28 = vmul.f32 %v4374_v56, %v2645_v26  ;;  %3149 = vmatmul.mubr.msk.f32.vlgmr.msra.gmra.mrb[0].mxu1 %vm383_vm6, %v2365_v16  ;;  %v3302_v48 = vpack.c.bf16 %v2641_v42, %v2640_v45  ;;  %v2806_v26 = vld [vmem:[#allocation7 + $0x118] sm:$0xff] }
 0x329   : > { %3295 = vmatpush1.bf16.msra.mxu1 %v3294_v18  ;;  %2451 = vmatprep.mubr.f32.mxu1 %v3701_v0  ;;  %v2804_v18 = vld [vmem:[#allocation7 + $0x108] sm:$0xff] }
 0x32a   : > { %3297 = vmatprep.subr.bf16.mxu1 %v3296_v29  ;;  %v2637_v31 = vpop.permute.xlu1 %2636  ;;  %v2631_v32 = vpop.permute.xlu0 %2630  ;;  %v3300_v33 = vpack.c.bf16 %v2651_v28, %v2649_v15 }
 0x32b   : > { %v2646_v41 = vsel %vm1337_vm0, %v2637_v31, %v2629_v22 }
 0x32c   : > { %3150 = vmatmul.mubr.msk.f32.gmra.mrb[2].mxu1 %vm383_vm6, %v2366_v13  ;;  %v2653_v46 = vmul.f32 %v4374_v56, %v2646_v41  ;;  %v3531_v41 = vld [vmem:[%s3921_s6 + $0x18] sm:$0xff] }
 0x32d   : > { %3299 = vmatpush1.bf16.msra.mxu1 %v3298_v21  ;;  %2457 = vmatprep.mubr.f32.mxu1 %v3701_v0  ;;  %v3529_v21 = vld [vmem:[%s3921_s6 + $0x8] sm:$0xff] }
 0x32e   : > { %3301 = vmatprep.subr.bf16.mxu1 %v3300_v33  ;;  %v2771_v38 = vpop.permute.xlu1 %2770  ;;  %v2639_v39 = vpop.permute.xlu0 %2638 }
 0x32f   : > { %v2647_v23 = vsel %vm1337_vm0, %v2639_v39, %v2631_v32  ;;  %v2643_v43 = vsel %vm1337_vm0, %v2631_v32, %v2639_v39 }
 0x330   : > { %3151 = vmatmul.mubr.msk.f32.gmra.mrb[4].mxu1 %vm383_vm6, %v2367_v34  ;;  %v2655_v25 = vmul.f32 %v4374_v56, %v2647_v23  ;;  %v2642_v56 = vsel %vm1337_vm0, %v2629_v22, %v2637_v31  ;;  %v2658_v22 = vld [vmem:[#allocation7 + $0xe8] sm:$0xff]  ;;  %v3528_v31 = vld [vmem:[%s3921_s6] sm:$0xff] }
 0x331   : > { %2463 = vmatprep.mubr.f32.mxu1 %v3701_v0  ;;  %v3306_v54 = vpack.c.bf16 %v2643_v43, %v2642_v56  ;;  %v3534_v56 = vld [vmem:[%s3921_s6 + $0x30] sm:$0xff] }
 0x332   : > { %v2779_v11 = vpop.permute.xlu1 %2778  ;;  %v2773_v36 = vpop.permute.xlu0 %2772  ;;  %v3304_v51 = vpack.c.bf16 %v2655_v25, %v2653_v46  ;;  %v3532_v46 = vld [vmem:[%s3921_s6 + $0x20] sm:$0xff] }
 0x333   : > { %v2790_v17 = vsel %vm1484_vm3, %v2779_v11, %v2771_v38  ;;  %v2786_v1 = vsel %vm1484_vm3, %v2771_v38, %v2779_v11 }
 0x334   : > { %3152 = vmatmul.mubr.msk.f32.gmra.mrb[6].mxu1 %vm383_vm6, %v2368_v40  ;;  %v2795_v49 = vmul.f32 %v4406_v30, %v2790_v17  ;;  %v2794_v5 = vmul.f32 %v4305_v57, %v2786_v1  ;;  %v3530_v40 = vld [vmem:[%s3921_s6 + $0x10] sm:$0xff] }
 0x335   : > { %2591 = vmatprep.mubr.f32.mxu1 %v3701_v0 }
 0x336   : > { %v2781_v47 = vpop.permute.xlu0 %2780  ;;  %v2775_v27 = vpop.permute.xlu1 %2774 }
 0x337   : > { %v2791_v37 = vsel %vm1484_vm3, %v2781_v47, %v2773_v36  ;;  %v2787_v59 = vsel %vm1484_vm3, %v2773_v36, %v2781_v47 }
 0x338   : > { %v2797_v50 = vmul.f32 %v4406_v30, %v2791_v37  ;;  %3153 = vmatmul.mubr.msk.f32.vlgmr.msra.gmra.mrb[0].mxu1 %vm383_vm6, %v2511_v12  ;;  %v2796_v35 = vmul.f32 %v4305_v57, %v2787_v59  ;;  %v3533_v37 = vld [vmem:[%s3921_s6 + $0x28] sm:$0xff] }
 0x339   : > { %3303 = vmatpush1.bf16.msra.mxu1 %v3302_v48  ;;  %2597 = vmatprep.mubr.f32.mxu1 %v3701_v0 }
 0x33a   : > { %3305 = vmatprep.subr.bf16.mxu1 %v3304_v51  ;;  %v2777_v44 = vpop.permute.xlu0 %2776  ;;  %v3308_v53 = vpack.c.bf16 %v2797_v50, %v2795_v49  ;;  %v2783_v60 = vpop.permute.xlu1 %2782  ;;  %v3310_v9 = vpack.c.bf16 %v2796_v35, %v2794_v5 }
 0x33b   : > { %v2792_v2 = vsel %vm1484_vm3, %v2783_v60, %v2775_v27  ;;  %v2788_v7 = vsel %vm1484_vm3, %v2775_v27, %v2783_v60 }
 0x33c   : > { %3154 = vmatmul.mubr.msk.f32.gmra.mrb[2].mxu1 %vm383_vm6, %v2512_v52  ;;  %v2799_v8 = vmul.f32 %v4406_v30, %v2792_v2  ;;  %v2798_v20 = vmul.f32 %v4305_v57, %v2788_v7 }
 0x33d   : > { %3307 = vmatpush1.bf16.msra.mxu1 %v3306_v54  ;;  %2603 = vmatprep.mubr.f32.mxu1 %v3701_v0 }
 0x33e   : > { %3309 = vmatprep.subr.bf16.mxu1 %v3308_v53  ;;  %v2785_v58 = vpop.permute.xlu0 %2784 }
 0x33f   : > { %v2793_v61 = vsel %vm1484_vm3, %v2785_v58, %v2777_v44  ;;  %v2789_v3 = vsel %vm1484_vm3, %v2777_v44, %v2785_v58  ;;  %v3535_v44 = vld [vmem:[%s3921_s6 + $0x38] sm:$0xff] }
 0x340   : > { %3155 = vmatmul.mubr.msk.f32.gmra.mrb[4].mxu1 %vm383_vm6, %v2513_v55  ;;  %v2801_v4 = vmul.f32 %v4406_v30, %v2793_v61  ;;  %v2800_v16 = vmul.f32 %v4305_v57, %v2789_v3  ;;  %v2660_v30 = vld [vmem:[#allocation7 + $0xf8] sm:$0xff]  ;;  %v2803_v57 = vld [vmem:[#allocation7 + $0x100] sm:$0xff] }
 0x341   : > { %2609 = vmatprep.mubr.f32.mxu1 %v3701_v0 }
 0x342   : > { %v3312_v19 = vpack.c.bf16 %v2801_v4, %v2799_v8  ;;  %v3314_v62 = vpack.c.bf16 %v2800_v16, %v2798_v20 }
 0x344   : > { %3156 = vmatmul.mubr.msk.f32.gmra.mrb[6].mxu1 %vm383_vm6, %v2514_v63 }
 0x345   : > { %2737 = vmatprep.mubr.f32.mxu1 %v3701_v0 }
 0x348   : > { %3157 = vmatmul.mubr.msk.f32.vlgmr.msra.gmra.mrb[0].mxu1 %vm383_vm6, %v2657_v6 }
 0x349   : > { %3311 = vmatpush1.bf16.msra.mxu1 %v3310_v9  ;;  %2743 = vmatprep.mubr.f32.mxu1 %v3701_v0 }
 0x34a   : > { %3313 = vmatprep.subr.bf16.mxu1 %v3312_v19 }
 0x34b   : > { %v2919_v15 = vpop.permute.xlu1 %2918 }
 0x34c   : > { %3158 = vmatmul.mubr.msk.f32.gmra.mrb[2].mxu1 %vm383_vm6, %v2658_v22 }
 0x34d   : > { %3315 = vmatpush1.bf16.msra.mxu1 %v3314_v62  ;;  %2749 = vmatprep.mubr.f32.mxu1 %v3701_v0 }
 0x34f   : > { %v2924_v33 = vpop.permute.xlu0 %2923  ;;  %v2929_v36 = vpop.permute.xlu1 %2928 }
 0x350   : > { %3159 = vmatmul.mubr.msk.f32.gmra.mrb[4].mxu1 %vm383_vm6, %v2659_v10 }
 0x351   : > { %2755 = vmatprep.mubr.f32.mxu1 %v3701_v0 }
 0x353   : > { %v2934_v48 = vpop.permute.xlu0 %2933 }
 0x354   : > { %3160 = vmatmul.mubr.msk.f32.gmra.mrb[6].mxu1 %vm383_vm6, %v2660_v30 }
 0x355   : > { %2883 = vmatprep.mubr.f32.mxu1 %v3701_v0 }
 0x358   : > { %3161 = vmatmul.mubr.msk.f32.vlgmr.msra.gmra.mrb[0].mxu1 %vm383_vm6, %v2803_v57 }
 0x359   : > { %2889 = vmatprep.mubr.f32.mxu1 %v3701_v0 }
 0x35c   : > { %3162 = vmatmul.mubr.msk.f32.gmra.mrb[2].mxu1 %vm383_vm6, %v2804_v18 }
 0x35d   : > { %2895 = vmatprep.mubr.f32.mxu1 %v3701_v0 }
 0x360   : > { %3163 = vmatmul.mubr.msk.f32.gmra.mrb[4].mxu1 %vm383_vm6, %v2805_v24 }
 0x361   : > { %2901 = vmatprep.mubr.f32.mxu1 %v3701_v0 }
 0x364   : > { %3164 = vmatmul.mubr.msk.f32.gmra.mrb[6].mxu1 %vm383_vm6, %v2806_v26 }
 0x42b   : > { %v2885_v28 = vpop.f32.mrb[0].mxu1 }
 0x42c   : > { %v2936_v29 = vadd.f32 %v2919_v15, %v2885_v28  ;;  %v2887_v14 = vpop.f32.mrb[1].mxu1 }
 0x42d   : > { %v2937_v13 = vadd.f32 %v2919_v15, %v2887_v14 }
 0x42e   : > { %v2944_v32 = vadd.f32 %v3528_v31, %v2936_v29 }
 0x42f   : > { %v2945_v34 = vadd.f32 %v3529_v21, %v2937_v13  ;;  %v2891_v38 = vpop.f32.mrb[2].mxu1 }
 0x430   : > { %2952 = vst [vmem:[%s4882_s7] sm:$0xff] %v2944_v32  ;;  %v2938_v0 = vadd.f32 %v2924_v33, %v2891_v38  ;;  %v2893_v39 = vpop.f32.mrb[3].mxu1 }
 0x431   : > { %2953 = vst [vmem:[%s4882_s7 + $0x8] sm:$0xff] %v2945_v34  ;;  %v2939_v23 = vadd.f32 %v2924_v33, %v2893_v39 }
 0x432   : > { %v2946_v11 = vadd.f32 %v3530_v40, %v2938_v0 }
 0x433   : > { %v2947_v42 = vadd.f32 %v3531_v41, %v2939_v23  ;;  %v2897_v25 = vpop.f32.mrb[4].mxu1 }
 0x434   : > { %2954 = vst [vmem:[%s4882_s7 + $0x10] sm:$0xff] %v2946_v11  ;;  %v2940_v17 = vadd.f32 %v2929_v36, %v2897_v25  ;;  %v2899_v12 = vpop.f32.mrb[5].mxu1 }
 0x435   : > { %2955 = vst [vmem:[%s4882_s7 + $0x18] sm:$0xff] %v2947_v42  ;;  %v2941_v45 = vadd.f32 %v2929_v36, %v2899_v12 }
 0x436   : > { %v2948_v47 = vadd.f32 %v3532_v46, %v2940_v17 }
 0x437   : > { %v2949_v43 = vadd.f32 %v3533_v37, %v2941_v45  ;;  %v2903_v49 = vpop.f32.mrb[6].mxu1 }
 0x438   : > { %2956 = vst [vmem:[%s4882_s7 + $0x20] sm:$0xff] %v2948_v47  ;;  %v2942_v50 = vadd.f32 %v2934_v48, %v2903_v49  ;;  %v2905_v51 = vpop.f32.mrb[7].mxu1 }
 0x439   : > { %2957 = vst [vmem:[%s4882_s7 + $0x28] sm:$0xff] %v2949_v43  ;;  %v2943_v52 = vadd.f32 %v2934_v48, %v2905_v51 }
 0x43a   : > { %v2950_v27 = vadd.f32 %v3534_v56, %v2942_v50 }
 0x43b   : > { %v2951_v53 = vadd.f32 %v3535_v44, %v2943_v52 }
 0x43c   : > { %2958 = vst [vmem:[%s4882_s7 + $0x30] sm:$0xff] %v2950_v27 }
 0x43d   : > { %2959 = vst [vmem:[%s4882_s7 + $0x38] sm:$0xff] %v2951_v53 }
 0x43e   : > { %3635 = shalt.err (!%p3632_p2)
}
 0x43f   : > { %s3636_s6 = scalar_lea.hbm %s4903_s24, 1024  ;;  %s3640_s13 = scalar_lea.hbm %s4955_s5, 2048 }
 0x440   : > { %p3637_p13 = scmp.ne.s32.totalorder %s4903_s24, %s3636_s6  ;;  %p3641_p4 = scmp.lt.u32.totalorder %s4903_s24, %s4955_s5 }
 0x441   : > { %p3642_p5 = scmp.lt.u32.totalorder %s3640_s13, %s3636_s6  ;;  %p3644_p11 = scmp.lt.u32.totalorder %s3636_s6, %s4903_s24 }
 0x442   : > { %p3638_p6 = pnand %p3637_p13, %p4977_p0 }
 0x443   : > { %p3643_p8 = por %p3642_p5, %p3641_p4 }
 0x444   : > { %p3639_p10 = pneg %p3638_p6 }
 0x445   : > { %p3645_p1 = por %p3644_p11, %p3643_p8 }
 0x447   : > { %p3646_p3 = pnand %p3645_p1, %p3639_p10 }
 0x449   : > { %3649 = shalt.err (!%p3646_p3)
}
 0x44a   : > { %s3712_s9 = smov 256  }
 0x44b   : > { %3454 = dma.vmem_to_hbm [thread:$0]  (%p4977_p0), %s4896_s17, 1024, %s4903_s24, %s2961_s8, %s3712_s9, %s3712_s9, %s3703_s26  }
 0x44c PF: > { %s2989_s12 = sand.u32 1, %s3680_s18   ;;  %p4978_p7 = scmp.ne.s32.totalorder %s4960_s25, 0 }
 0x44d   : > { %p4979_p9 = scmp.ge.s32.totalorder %s3692_s21, 2  ;;  %s2990_s22 = scalar_lea.sflag [#allocation4], %s2989_s12 }
 0x44f   : > { %p3468_p12 = pnand %p4979_p9, %p4978_p7 }
 0x451   : > { %3675 = dma.done.wait (!%p3468_p12), %s2990_s22, 1024  }
 0x452   : > { %3677 = vsyncadd (!%p3468_p12), %s2990_s22, 4294966272  ;;  %p19_p2 = scmp.ge.s32.totalorder %s3853_s14, 4   ;;  %s4980_s18 = smov %s3684_s19 }
 0x453   : > { %s4981_s19 = smov %s3688_s20  ;;  %s4982_s20 = smov %s3869_s27 }
 0x454   : > { %s4983_s21 = smov %s3853_s14  ;;  %21 = sbr.rel (!%p19_p2) target bundleno = 6 (0x6), region = 109 }
 0x45b   :  { %2995 = vsyncpa [#allocation3], 1 }
 0x45c   :  { %2997 = vsyncpa [#allocation3 + $0x1], 1 }
 0x45d   :  { %2998 = vsyncpa [#allocation6], 1 }
 0x45e   :  { %2999 = vsyncpa [#allocation4], 1 }
 0x45f   :  { %3001 = vsyncpa [#allocation4 + $0x1], 1 }

</bundles_post_ra>
